<compile_context>
chip_gen: v6e
topology: v6e:2x2x1
jax: 0.10.0
libtpu: 0.0.40
codegen_flags: <defaults>
</compile_context>

<pallas_src>
import functools

import jax
import jax.numpy as jnp
from jax import lax
from jax.experimental import pallas as pl
from jax.experimental.pallas import tpu as pltpu

# ------------------------- configuration (small test) -------------------------
B = 2            # batch
C = 32           # in_dim (feature channels)
H = 16           # spatial height
W = 16           # spatial width
SAMPLE = 32      # sample_size
OUT_DIM = 2      # out_dim ('l1' mode)
HIDDEN = 512     # fixed by the module definition
OUT_PAD = 128    # pad final output lanes so the store is lane-dense


# ------------------------------ Pallas kernel ---------------------------------
def _drloc_kernel(x_ref, idx_ref, w1_ref, b1_ref, w2_ref, b2_ref, w3_ref, b3_ref,
                  o_ref, *, c, s):
    """One grid step == one image.

    x_ref:   (1, C, H*W) f32   channels-first feature map of this image
    idx_ref: (1, 2S, 1)  int32 flat spatial positions; rows [0,S)=x-samples, [S,2S)=y
    w1: (2C, 512) f32   b1: (1, 512) f32
    w2: (512, 512) bf16 b2: (1, 512) f32
    w3: (512, 128) bf16 (out_dim zero-padded to 128 lanes)   b3: (1, 128) f32
    o_ref:   (S, 128) f32
    """
    x_cf = x_ref[0]                                        # (C, HW)
    idx = idx_ref[0]                                       # (2S, 1)
    hw = x_cf.shape[1]
    m2 = idx.shape[0]                                      # 2S

    # ---- fused one-hot gather for BOTH coordinate sets (one MXU matmul) ----
    cols = lax.broadcasted_iota(jnp.int32, (m2, hw), 1)    # (2S, HW)
    onehot = (idx == cols).astype(jnp.float32)             # (2S, HW), exact 0/1
    # NT matmul: contract the HW axis of the one-hot with the HW axis of the
    # channels-first map -> (2S, C).  No NHWC transpose needed anywhere.
    pts = lax.dot_general(onehot, x_cf,
                          dimension_numbers=(((1,), (1,)), ((), ())),
                          preferred_element_type=jnp.float32)          # (2S, C)
    ptsx = pts[:s, :]                                      # (S, C)
    ptsy = pts[s:, :]                                      # (S, C)

    # ---- fc1 on cat([ptsx, ptsy], -1) without a lane concat ----
    w1 = w1_ref[...]                                       # (2C, HIDDEN) f32
    h = (jnp.dot(ptsx, w1[:c, :], preferred_element_type=jnp.float32)
         + jnp.dot(ptsy, w1[c:, :], preferred_element_type=jnp.float32)
         + b1_ref[...])
    h = jnp.maximum(h, 0.0)                                # ReLU (f32 VPU)

    # ---- fc2: bf16 MXU operands, f32 accumulate; bias/ReLU stay f32 ----
    h = jnp.dot(h.astype(jnp.bfloat16), w2_ref[...],
                preferred_element_type=jnp.float32) + b2_ref[...]
    h = jnp.maximum(h, 0.0)

    # ---- fc3: out_dim padded to 128 lanes -> unmasked, lane-dense store ----
    o_ref[...] = (jnp.dot(h.astype(jnp.bfloat16), w3_ref[...],
                          preferred_element_type=jnp.float32)
                  + b3_ref[...]).astype(o_ref.dtype)


# --------------------------------- wrapper -------------------------------------
def prepare_params(params):
    """One-time packing for the kernel (not per-call work): bf16 casts for the two
    large weights and zero-padding of the fc3 weight/bias to 128 output lanes."""
    w3p = jnp.zeros((HIDDEN, OUT_PAD), jnp.float32).at[:, :OUT_DIM].set(params["w3"])
    b3p = jnp.zeros((1, OUT_PAD), jnp.float32).at[:, :OUT_DIM].set(params["b3"])
    return {
        "w1": params["w1"].astype(jnp.float32),
        "b1": params["b1"].astype(jnp.float32),
        "w2": params["w2"].astype(jnp.bfloat16),
        "b2": params["b2"].astype(jnp.float32),
        "w3p": w3p.astype(jnp.bfloat16),
        "b3p": b3p,
    }


def dense_relative_loc(x, pxs, pys, kp):
    """DenseRelativeLoc.forward (drloc_mode='l1', use_abs=False, normalize=False).

    x:   (B, C, H, W) float32 feature map (NCHW, as in the PyTorch module)
    pxs: (B, S, 2) int32 sampled (row, col) positions
    pys: (B, S, 2) int32 sampled (row, col) positions
    kp:  prepare_params(...) output
    Returns (predxy, deltaxy) with shapes (B*S, out_dim) and (B*S, 2).
    """
    b, c, h, w = x.shape
    s = pxs.shape[1]
    m = b * s
    hw = h * w

    # NCHW -> (B, C, H*W): metadata-only reshape, no transpose.
    x3 = x.reshape(b, c, hw)
    # Flat spatial indices (row * W + col; the PyTorch code uses *H which is
    # identical for square maps), x-samples and y-samples fused into one tensor
    # so the kernel performs a single one-hot gather matmul per image.
    fx = (pxs[..., 0] * w + pxs[..., 1]).astype(jnp.int32)          # (B, S)
    fy = (pys[..., 0] * w + pys[..., 1]).astype(jnp.int32)          # (B, S)
    idx = jnp.concatenate([fx, fy], axis=1).reshape(b, 2 * s, 1)    # (B, 2S, 1)

    flops = 2 * b * s * (2 * hw * c + 2 * c * HIDDEN
                         + HIDDEN * HIDDEN + HIDDEN * OUT_PAD)
    bytes_accessed = (x3.size * 4 + idx.size * 4
                      + kp["w1"].size * 4 + kp["b1"].size * 4
                      + kp["w2"].size * 2 + kp["b2"].size * 4
                      + kp["w3p"].size * 2 + kp["b3p"].size * 4
                      + m * OUT_PAD * 4)

    grid_spec = pltpu.PrefetchScalarGridSpec(
        num_scalar_prefetch=0,
        grid=(b,),
        in_specs=[
            pl.BlockSpec((1, c, hw), lambda i: (i, 0, 0)),        # per-image features
            pl.BlockSpec((1, 2 * s, 1), lambda i: (i, 0, 0)),     # per-image indices
            pl.BlockSpec((2 * c, HIDDEN), lambda i: (0, 0)),      # weights: constant
            pl.BlockSpec((1, HIDDEN), lambda i: (0, 0)),          #   index_map ->
            pl.BlockSpec((HIDDEN, HIDDEN), lambda i: (0, 0)),     #   DMA'd once,
            pl.BlockSpec((1, HIDDEN), lambda i: (0, 0)),          #   stay resident
            pl.BlockSpec((HIDDEN, OUT_PAD), lambda i: (0, 0)),
            pl.BlockSpec((1, OUT_PAD), lambda i: (0, 0)),
        ],
        out_specs=pl.BlockSpec((s, OUT_PAD), lambda i: (i, 0)),
    )

    pred_pad = pl.pallas_call(
        functools.partial(_drloc_kernel, c=c, s=s),
        out_shape=jax.ShapeDtypeStruct((m, OUT_PAD), jnp.float32),
        grid_spec=grid_spec,
        compiler_params=pltpu.CompilerParams(dimension_semantics=("parallel",)),
        cost_estimate=pl.CostEstimate(flops=int(flops), transcendentals=0,
                                      bytes_accessed=int(bytes_accessed)),
    )(x3, idx, kp["w1"], kp["b1"], kp["w2"], kp["b2"], kp["w3p"], kp["b3p"])

    predxy = pred_pad[:, :OUT_DIM]                                   # (B*S, out_dim)
    # deltaxy is pure index arithmetic on the sampled positions (not kernel work).
    deltaxy = (pxs - pys).astype(jnp.float32).reshape(m, 2) + (h - 1)
    return predxy, deltaxy


# ----------------------------- parameter init ----------------------------------
def init_params(key):
    k1, k2, k3, k4, k5, k6 = jax.random.split(key, 6)
    s1 = (2 * C) ** -0.5
    s2 = HIDDEN ** -0.5
    # Linear weights stored pre-transposed: (in_dim, out_dim), f32 "master" copies.
    return {
        "w1": s1 * jax.random.normal(k1, (2 * C, HIDDEN), jnp.float32),
        "b1": s1 * jax.random.normal(k2, (1, HIDDEN), jnp.float32),
        "w2": s2 * jax.random.normal(k3, (HIDDEN, HIDDEN), jnp.float32),
        "b2": s2 * jax.random.normal(k4, (1, HIDDEN), jnp.float32),
        "w3": s2 * jax.random.normal(k5, (HIDDEN, OUT_DIM), jnp.float32),
        "b3": s2 * jax.random.normal(k6, (1, OUT_DIM), jnp.float32),
    }


# ---------------------------- pure-JAX f32 reference ----------------------------
def dense_relative_loc_ref(x, pxs, pys, p):
    b, c, h, w = x.shape
    xf = jnp.transpose(x, (0, 2, 3, 1)).reshape(b, h * w, c)
    fx = pxs[..., 0] * w + pxs[..., 1]
    fy = pys[..., 0] * w + pys[..., 1]
    ptsx = jnp.take_along_axis(xf, fx[..., None], axis=1)   # (B, S, C)
    ptsy = jnp.take_along_axis(xf, fy[..., None], axis=1)   # (B, S, C)
    z = jnp.concatenate([ptsx, ptsy], axis=-1)              # (B, S, 2C)
    z = jax.nn.relu(z @ p["w1"] + p["b1"][0])
    z = jax.nn.relu(z @ p["w2"] + p["b2"][0])
    pred = z @ p["w3"] + p["b3"][0]                         # (B, S, out_dim)
    predxy = pred.reshape(-1, OUT_DIM)
    deltaxy = (pxs - pys).astype(jnp.float32).reshape(-1, 2) + (h - 1)
    return predxy, deltaxy


# ------------------------------------ main ---------------------------------------
if __name__ == "__main__":
    key = jax.random.PRNGKey(0)
    kx, kpx, kpy, kpar = jax.random.split(key, 4)

    x = jax.random.normal(kx, (B, C, H, W), jnp.float32)
    # randn_sampling: torch.randint(H, size=(B, S, 2)) for both coord sets
    # (randomness lives in the driver, not the kernel).
    pxs = jax.random.randint(kpx, (B, SAMPLE, 2), 0, H, dtype=jnp.int32)
    pys = jax.random.randint(kpy, (B, SAMPLE, 2), 0, H, dtype=jnp.int32)

    params = init_params(kpar)
    kparams = prepare_params(params)      # one-time bf16 casts + 128-lane padding

    fwd = jax.jit(dense_relative_loc)
    predxy, deltaxy = fwd(x, pxs, pys, kparams)
    predxy = jax.block_until_ready(predxy)
    deltaxy = jax.block_until_ready(deltaxy)

    ref_pred, ref_delta = dense_relative_loc_ref(x, pxs, pys, params)
    assert predxy.shape == (B * SAMPLE, OUT_DIM)
    assert deltaxy.shape == (B * SAMPLE, 2)
    # fc2/fc3 run with bf16 MXU operands (f32 accumulation), so compare against the
    # full-f32 reference at a bf16-appropriate tolerance.
    assert jnp.allclose(predxy, ref_pred, atol=5e-2, rtol=5e-2), (
        float(jnp.max(jnp.abs(predxy - ref_pred))))
    assert jnp.allclose(deltaxy, ref_delta), (
        float(jnp.max(jnp.abs(deltaxy - ref_delta))))

    print("KERNEL_OK")
</pallas_src>

<mosaic_0001>
module attributes {stable_mosaic.version = 11 : i64} {
  func.func @_drloc_kernel(%arg0: i32, %arg1: memref<1x32x256xf32, #tpu.memory_space<vmem>>, %arg2: memref<1x64x1xi32, #tpu.memory_space<vmem>>, %arg3: memref<64x512xf32, #tpu.memory_space<vmem>>, %arg4: memref<1x512xf32, #tpu.memory_space<vmem>>, %arg5: memref<512x512xbf16, #tpu.memory_space<vmem>>, %arg6: memref<1x512xf32, #tpu.memory_space<vmem>>, %arg7: memref<512x128xbf16, #tpu.memory_space<vmem>>, %arg8: memref<1x128xf32, #tpu.memory_space<vmem>>, %arg9: memref<32x128xf32, #tpu.memory_space<vmem>>) attributes {dimension_semantics = [#tpu.dimension_semantics<parallel>], iteration_bounds = array<i64: 2>, scalar_prefetch = 0 : i64, scratch_operands = 0 : i64, tpu.core_type = #tpu.core_type<tc>, window_params = [{transform_indices = @transform_0, window_bounds = array<i64: 1, 32, 256>}, {transform_indices = @transform_1, window_bounds = array<i64: 1, 64, 1>}, {pipeline_mode = #tpu.pipeline_mode<synchronous>, transform_indices = @transform_2, window_bounds = array<i64: 64, 512>}, {pipeline_mode = #tpu.pipeline_mode<synchronous>, transform_indices = @transform_3, window_bounds = array<i64: 1, 512>}, {pipeline_mode = #tpu.pipeline_mode<synchronous>, transform_indices = @transform_4, window_bounds = array<i64: 512, 512>}, {pipeline_mode = #tpu.pipeline_mode<synchronous>, transform_indices = @transform_5, window_bounds = array<i64: 1, 512>}, {pipeline_mode = #tpu.pipeline_mode<synchronous>, transform_indices = @transform_6, window_bounds = array<i64: 512, 128>}, {pipeline_mode = #tpu.pipeline_mode<synchronous>, transform_indices = @transform_7, window_bounds = array<i64: 1, 128>}, {transform_indices = @transform_8, window_bounds = array<i64: 32, 128>}]} {
    %c0 = arith.constant 0 : index
    %c0_0 = arith.constant 0 : index
    %c0_1 = arith.constant 0 : index
    %0 = vector.load %arg1[%c0, %c0_0, %c0_1] : memref<1x32x256xf32, #tpu.memory_space<vmem>>, vector<1x32x256xf32>
    %1 = vector.shape_cast %0 : vector<1x32x256xf32> to vector<32x256xf32>
    %c0_2 = arith.constant 0 : index
    %c0_3 = arith.constant 0 : index
    %c0_4 = arith.constant 0 : index
    %2 = vector.load %arg2[%c0_2, %c0_3, %c0_4] : memref<1x64x1xi32, #tpu.memory_space<vmem>>, vector<1x64x1xi32>
    %3 = vector.shape_cast %2 : vector<1x64x1xi32> to vector<64x1xi32>
    %4 = tpu.iota {dimensions = array<i32: 1>} : vector<64x256xi32>
    %5 = vector.broadcast %3 : vector<64x1xi32> to vector<64x256xi32>
    %6 = arith.cmpi eq, %5, %4 : vector<64x256xi32>
    %7 = arith.extui %6 : vector<64x256xi1> to vector<64x256xi32>
    %8 = arith.sitofp %7 : vector<64x256xi32> to vector<64x256xf32>
    %cst = arith.constant dense<0.000000e+00> : vector<64x32xf32>
    %9 = tpu.matmul %8, %1, %cst {dimension_numbers = #tpu.dot_dimension_numbers<[1], [1], [0], [0], [0, 0, 1, 0], [], []>} : vector<64x256xf32>, vector<32x256xf32>, vector<64x32xf32> -> vector<64x32xf32>
    %10 = vector.extract_strided_slice %9 {offsets = [0, 0], sizes = [32, 32], strides = [1, 1]} : vector<64x32xf32> to vector<32x32xf32>
    %11 = vector.extract_strided_slice %9 {offsets = [32, 0], sizes = [32, 32], strides = [1, 1]} : vector<64x32xf32> to vector<32x32xf32>
    %c0_5 = arith.constant 0 : index
    %c0_6 = arith.constant 0 : index
    %12 = vector.load %arg3[%c0_5, %c0_6] : memref<64x512xf32, #tpu.memory_space<vmem>>, vector<64x512xf32>
    %13 = vector.extract_strided_slice %12 {offsets = [0, 0], sizes = [32, 512], strides = [1, 1]} : vector<64x512xf32> to vector<32x512xf32>
    %cst_7 = arith.constant dense<0.000000e+00> : vector<32x512xf32>
    %14 = tpu.matmul %10, %13, %cst_7 {dimension_numbers = #tpu.dot_dimension_numbers<[1], [0], [0], [1], [0, 0, 1, 1], [], []>} : vector<32x32xf32>, vector<32x512xf32>, vector<32x512xf32> -> vector<32x512xf32>
    %15 = vector.extract_strided_slice %12 {offsets = [32, 0], sizes = [32, 512], strides = [1, 1]} : vector<64x512xf32> to vector<32x512xf32>
    %cst_8 = arith.constant dense<0.000000e+00> : vector<32x512xf32>
    %16 = tpu.matmul %11, %15, %cst_8 {dimension_numbers = #tpu.dot_dimension_numbers<[1], [0], [0], [1], [0, 0, 1, 1], [], []>} : vector<32x32xf32>, vector<32x512xf32>, vector<32x512xf32> -> vector<32x512xf32>
    %17 = arith.addf %14, %16 : vector<32x512xf32>
    %c0_9 = arith.constant 0 : index
    %c0_10 = arith.constant 0 : index
    %18 = vector.load %arg4[%c0_9, %c0_10] : memref<1x512xf32, #tpu.memory_space<vmem>>, vector<1x512xf32>
    %19 = vector.broadcast %18 : vector<1x512xf32> to vector<32x512xf32>
    %20 = arith.addf %17, %19 : vector<32x512xf32>
    %cst_11 = arith.constant 0.000000e+00 : f32
    %21 = vector.broadcast %cst_11 : f32 to vector<32x512xf32>
    %22 = arith.maximumf %20, %21 : vector<32x512xf32>
    %23 = arith.truncf %22 : vector<32x512xf32> to vector<32x512xbf16>
    %c0_12 = arith.constant 0 : index
    %c0_13 = arith.constant 0 : index
    %24 = vector.load %arg5[%c0_12, %c0_13] : memref<512x512xbf16, #tpu.memory_space<vmem>>, vector<512x512xbf16>
    %cst_14 = arith.constant dense<0.000000e+00> : vector<32x512xf32>
    %25 = tpu.matmul %23, %24, %cst_14 {dimension_numbers = #tpu.dot_dimension_numbers<[1], [0], [0], [1], [0, 0, 1, 1], [], []>} : vector<32x512xbf16>, vector<512x512xbf16>, vector<32x512xf32> -> vector<32x512xf32>
    %c0_15 = arith.constant 0 : index
    %c0_16 = arith.constant 0 : index
    %26 = vector.load %arg6[%c0_15, %c0_16] : memref<1x512xf32, #tpu.memory_space<vmem>>, vector<1x512xf32>
    %27 = vector.broadcast %26 : vector<1x512xf32> to vector<32x512xf32>
    %28 = arith.addf %25, %27 : vector<32x512xf32>
    %cst_17 = arith.constant 0.000000e+00 : f32
    %29 = vector.broadcast %cst_17 : f32 to vector<32x512xf32>
    %30 = arith.maximumf %28, %29 : vector<32x512xf32>
    %31 = arith.truncf %30 : vector<32x512xf32> to vector<32x512xbf16>
    %c0_18 = arith.constant 0 : index
    %c0_19 = arith.constant 0 : index
    %32 = vector.load %arg7[%c0_18, %c0_19] : memref<512x128xbf16, #tpu.memory_space<vmem>>, vector<512x128xbf16>
    %cst_20 = arith.constant dense<0.000000e+00> : vector<32x128xf32>
    %33 = tpu.matmul %31, %32, %cst_20 {dimension_numbers = #tpu.dot_dimension_numbers<[1], [0], [0], [1], [0, 0, 1, 1], [], []>} : vector<32x512xbf16>, vector<512x128xbf16>, vector<32x128xf32> -> vector<32x128xf32>
    %c0_21 = arith.constant 0 : index
    %c0_22 = arith.constant 0 : index
    %34 = vector.load %arg8[%c0_21, %c0_22] : memref<1x128xf32, #tpu.memory_space<vmem>>, vector<1x128xf32>
    %35 = vector.broadcast %34 : vector<1x128xf32> to vector<32x128xf32>
    %36 = arith.addf %33, %35 : vector<32x128xf32>
    %c0_23 = arith.constant 0 : index
    %c0_24 = arith.constant 0 : index
    %37 = vector.load %arg9[%c0_23, %c0_24] : memref<32x128xf32, #tpu.memory_space<vmem>>, vector<32x128xf32>
    tpu.vector_store %arg9[%c0_23, %c0_24], %36 {strides = array<i32>} : memref<32x128xf32, #tpu.memory_space<vmem>>, vector<32x128xf32>,
    return
  }
  func.func @transform_0(%arg0: i32) -> (i32, i32, i32) {
    %c0_i32 = arith.constant 0 : i32
    %c0_i32_0 = arith.constant 0 : i32
    %c0_i32_1 = arith.constant 0 : i32
    return %arg0, %c0_i32, %c0_i32_0 : i32, i32, i32
  }
  func.func @transform_1(%arg0: i32) -> (i32, i32, i32) {
    %c0_i32 = arith.constant 0 : i32
    %c0_i32_0 = arith.constant 0 : i32
    %c0_i32_1 = arith.constant 0 : i32
    return %arg0, %c0_i32, %c0_i32_0 : i32, i32, i32
  }
  func.func @transform_2(%arg0: i32) -> (i32, i32) {
    %c0_i32 = arith.constant 0 : i32
    %c0_i32_0 = arith.constant 0 : i32
    %c0_i32_1 = arith.constant 0 : i32
    return %c0_i32, %c0_i32_0 : i32, i32
  }
  func.func @transform_3(%arg0: i32) -> (i32, i32) {
    %c0_i32 = arith.constant 0 : i32
    %c0_i32_0 = arith.constant 0 : i32
    %c0_i32_1 = arith.constant 0 : i32
    return %c0_i32, %c0_i32_0 : i32, i32
  }
  func.func @transform_4(%arg0: i32) -> (i32, i32) {
    %c0_i32 = arith.constant 0 : i32
    %c0_i32_0 = arith.constant 0 : i32
    %c0_i32_1 = arith.constant 0 : i32
    return %c0_i32, %c0_i32_0 : i32, i32
  }
  func.func @transform_5(%arg0: i32) -> (i32, i32) {
    %c0_i32 = arith.constant 0 : i32
    %c0_i32_0 = arith.constant 0 : i32
    %c0_i32_1 = arith.constant 0 : i32
    return %c0_i32, %c0_i32_0 : i32, i32
  }
  func.func @transform_6(%arg0: i32) -> (i32, i32) {
    %c0_i32 = arith.constant 0 : i32
    %c0_i32_0 = arith.constant 0 : i32
    %c0_i32_1 = arith.constant 0 : i32
    return %c0_i32, %c0_i32_0 : i32, i32
  }
  func.func @transform_7(%arg0: i32) -> (i32, i32) {
    %c0_i32 = arith.constant 0 : i32
    %c0_i32_0 = arith.constant 0 : i32
    %c0_i32_1 = arith.constant 0 : i32
    return %c0_i32, %c0_i32_0 : i32, i32
  }
  func.func @transform_8(%arg0: i32) -> (i32, i32) {
    %c0_i32 = arith.constant 0 : i32
    %c0_i32_0 = arith.constant 0 : i32
    return %arg0, %c0_i32 : i32, i32
  }
}

</mosaic_0001>

<bundles_post_ra>
// kernel: dense_relative_loc.1
= control target key start
LH: loop header
LB: loop body
LE: loop exit
PB: predicated region body
PF: predicated region fallthrough
CT: control target
= control target key end

     0   :  { %13 = vsyncpa [#allocation3], 0  ;;  %s3106_s27 = smov 0   ;;  %s3470_s0 = inlined_call_operand.vmem [shape: f32[2,32,256], index: 0, kind: input, shape index: {}]   ;;  %s3471_s1 = inlined_call_operand.vmem [shape: s32[2,64,1], index: 1, kind: input, shape index: {}]   ;;  %s3472_s2 = inlined_call_operand.vmem [shape: f32[64,512], index: 2, kind: input, shape index: {}]   ;;  %s3473_s3 = inlined_call_operand.vmem [shape: f32[1,512], index: 3, kind: input, shape index: {}]   ;;  %s3474_s4 = inlined_call_operand.hbm [shape: bf16[512,512], index: 4, kind: input, shape index: {}]   ;;  %s3475_s5 = inlined_call_operand.vmem [shape: f32[1,512], index: 5, kind: input, shape index: {}]   ;;  %s3476_s6 = inlined_call_operand.vmem [shape: bf16[512,128], index: 6, kind: input, shape index: {}]   ;;  %s3477_s7 = inlined_call_operand.vmem [shape: f32[1,128], index: 7, kind: input, shape index: {}]   ;;  %s3478_s8 = inlined_call_operand.vmem [shape: f32[64,128], index: 8, kind: output, shape index: {}]  }
   0x1 LB: > { %s3112_s28 = sadd.s32 4294967295, %s3053_s27   ;;  %p2487_p0 = scmp.ge.s32.totalorder %s3053_s27, 1  ;;  %s3053_s27 = sphi %s3106_s27, %s19_s27  }
   0x2   : > { %p228_p1 = scmp.lt.s32.totalorder %s3053_s27, 3  ;;  %s3055_s29 = smov [#allocation2]  }
   0x3   : > { %s246_s30 = sshll.u32 %s3055_s29, 4  ;;  %p2775_p3 = scmp.eq.s32.totalorder %s3112_s28, 0  ;;  %s247_s30 = int_to_ptr.vmem [resolvable:$true] %s246_s30 }
   0x4   : > { %p3116_p2 = pnand %p2487_p0, %p228_p1  ;;  %s3028_s10 = scalar_lea.vmem %s247_s30, 16384 }
   0x5   : > { %p3029_p7 = scmp.ne.s32.totalorder %s247_s30, %s3028_s10  ;;  %p3036_p10 = scmp.lt.s32.totalorder %s247_s30, %s247_s30 }
   0x6   : > { %p2771_p4 = pneg %p3116_p2  ;;  %p3037_p11 = scmp.lt.s32.totalorder %s3028_s10, %s3028_s10 }
   0x8   : > { %p2772_p5 = pnand %p2775_p3, %p2771_p4  ;;  %p3038_p12 = por %p3037_p11, %p3036_p10 }
   0xa   : > { %p3019_p6 = pneg %p2772_p5 }
   0xc   : > { %p3031_p8 = pnand %p3029_p7, %p3019_p6 }
   0xe   : > { %p3032_p9 = pneg %p3031_p8 }
  0x10   : > { %p3039_p13 = pnand %p3038_p12, %p3032_p9 }
  0x12   : > { %3042 = shalt.err (!%p3039_p13)
}
  0x13   : > { %s3056_s11 = smov 256   ;;  %s3057_s12 = smov 16  }
  0x14   : > { %2774 = dma.hbm_to_vmem [thread:$0]  (!%p2772_p5), %s3474_s4, 16384, %s247_s30, [#allocation3], %s3056_s11, %s3056_s11, %s3057_s12  }
  0x15   : > { %287 = sbr.rel (%p3116_p2) target bundleno = 1093 (0x445), region = 52 }
  0x1a   : > { %3048 = dma.done.wait (%p2775_p3), [#allocation3], 16384  }
  0x1b   : > { %3050 = vsyncadd (%p2775_p3), [#allocation3], 4294950912  ;;  %p326_p0 = scmp.lt.s32.totalorder %s3112_s28, 1  ;;  %v3058_v0 = vmov 0   ;;  %v554_v17 = vld [vmem:[%s3472_s2 + $0x78] sm:$0xff]  ;;  %v359_v18 = vlaneseq  ;;  %v553_v22 = vld [vmem:[%s3472_s2 + $0x70] sm:$0xff] }
  0x1c   : > { %2792 = vset.pattern.permute.xlu1 %v3058_v0  ;;  %2791 = vset.pattern.permute.xlu0 %v3058_v0  ;;  %v3059_v23 = vmov 1.0   ;;  %v550_v24 = vld [vmem:[%s3472_s2 + $0x58] sm:$0xff]  ;;  %v549_v25 = vld [vmem:[%s3472_s2 + $0x50] sm:$0xff]  ;;  %v3060_v37 = vmov 0.0   ;;  %v568_v38 = vld [vmem:[%s3472_s2 + $0xe8] sm:$0xff] }
  0x1d   : > { %s327_s15 = scalar_select %p326_p0, %s3112_s28, 1  ;;  %v360_v19 = vand.u32 127, %v359_v18  ;;  %v546_v28 = vld [vmem:[%s3472_s2 + $0x38] sm:$0xff]  ;;  %v545_v29 = vld [vmem:[%s3472_s2 + $0x30] sm:$0xff]  ;;  %648 = vmatprep.mubr.f32.mxu1 %v3060_v37  ;;  %v567_v39 = vld [vmem:[%s3472_s2 + $0xe0] sm:$0xff]  ;;  %608 = vmatprep.subr.mxu1 %v568_v38 }
  0x1e   : > { %v542_v30 = vld [vmem:[%s3472_s2 + $0x18] sm:$0xff]  ;;  %v541_v36 = vld [vmem:[%s3472_s2 + $0x10] sm:$0xff]  ;;  %609 = vmatpush1.msra.mxu1 %v567_v39  ;;  %v564_v40 = vld [vmem:[%s3472_s2 + $0xc8] sm:$0xff] }
  0x1f   : > { %s2709_s16 = sshll.u32 %s327_s15, 6  ;;  %v361_v20 = vadd.s32 128, %v360_v19  ;;  %v563_v41 = vld [vmem:[%s3472_s2 + $0xc0] sm:$0xff]  ;;  %610 = vmatprep.subr.mxu1 %v564_v40  ;;  %v560_v42 = vld [vmem:[%s3472_s2 + $0xa8] sm:$0xff]  ;;  %v570_v46 = vld [vmem:[%s3472_s2 + $0xf8] sm:$0xff]  ;;  %s2496_s15 = sshll.u32 %s3112_s28, 2 }
  0x20   : > { %s335_s19 = scalar_lea.vmem %s3471_s1, %s2709_s16  ;;  %s330_s22 = scalar_lea.vmem %s3470_s0, %s2709_s16  ;;  %611 = vmatpush1.msra.mxu1 %v563_v41  ;;  %v559_v43 = vld [vmem:[%s3472_s2 + $0xa0] sm:$0xff]  ;;  %v556_v44 = vld [vmem:[%s3472_s2 + $0x88] sm:$0xff]  ;;  %v569_v0 = vld [vmem:[%s3472_s2 + $0xf0] sm:$0xff] }
  0x21   : > { %v353_v1 = vld [vmem:[%s335_s19 + $0x10] sm:$0xff]  ;;  %v351_v2 = vld [vmem:[%s335_s19] sm:$0xff]  ;;  %v354_v3 = vld [vmem:[%s335_s19 + $0x18] sm:$0xff]  ;;  %612 = vmatprep.subr.mxu1 %v560_v42  ;;  %p337_p1 = scmp.lt.s32.totalorder %s2496_s15, 7 }
  0x22   : > { %369 = vperm.xlu1 %2792, %v353_v1   ;;  %363 = vperm.xlu0 %2791, %v351_v2   ;;  %v352_v4 = vld [vmem:[%s335_s19 + $0x8] sm:$0xff]  ;;  %v350_v5 = vld [vmem:[%s330_s22 + $0x38] sm:$0xff]  ;;  %v349_v6 = vld [vmem:[%s330_s22 + $0x30] sm:$0xff] }
  0x23   : > { %458 = vmatprep.subr.mxu0 %v350_v5  ;;  %v348_v7 = vld [vmem:[%s330_s22 + $0x28] sm:$0xff]  ;;  %v355_v9 = vld [vmem:[%s335_s19 + $0x20] sm:$0xff]  ;;  %v346_v11 = vld [vmem:[%s330_s22 + $0x18] sm:$0xff]  ;;  %613 = vmatpush1.msra.mxu1 %v559_v43  ;;  %s3481_s15 = smov (!%p337_p1, %s2496_s15), 7 }
  0x24   : > { %v356_v8 = vld [vmem:[%s335_s19 + $0x28] sm:$0xff]  ;;  %459 = vmatpush1.xpose.msra.mxu0 %v349_v6  ;;  %v347_v10 = vld [vmem:[%s330_s22 + $0x20] sm:$0xff]  ;;  %v345_v12 = vld [vmem:[%s330_s22 + $0x10] sm:$0xff]  ;;  %614 = vmatprep.subr.mxu1 %v556_v44  ;;  %s2497_s18 = sshll.u32 %s3481_s15, 3 }
  0x25   : > { %460 = vmatprep.subr.mxu0 %v348_v7  ;;  %v358_v13 = vld [vmem:[%s335_s19 + $0x38] sm:$0xff]  ;;  %v357_v14 = vld [vmem:[%s335_s19 + $0x30] sm:$0xff]  ;;  %v344_v15 = vld [vmem:[%s330_s22 + $0x8] sm:$0xff]  ;;  %s340_s28 = scalar_lea.vmem %s3478_s8, %s2497_s18 }
  0x26   : > { %372 = vperm.xlu1 %2792, %v354_v3   ;;  %366 = vperm.xlu0 %2791, %v352_v4   ;;  %v343_v16 = vld [vmem:[%s330_s22] sm:$0xff]  ;;  %v566_v3 = vld [vmem:[%s3472_s2 + $0xd8] sm:$0xff]  ;;  %v565_v4 = vld [vmem:[%s3472_s2 + $0xd0] sm:$0xff] }
  0x27   : > { %v555_v45 = vld [vmem:[%s3472_s2 + $0x80] sm:$0xff]  ;;  %v562_v6 = vld [vmem:[%s3472_s2 + $0xb8] sm:$0xff]  ;;  %v561_v7 = vld [vmem:[%s3472_s2 + $0xb0] sm:$0xff] }
  0x28   : > { %461 = vmatpush1.xpose.msra.mxu0 %v347_v10  ;;  %615 = vmatpush1.msra.mxu1 %v555_v45  ;;  %v2795_v47 = vld [vmem:[#allocation2 + $0x2e4] ss:$16 sps:$4 sm:$0xff]   ;;  %v2793_v48 = vld [vmem:[#allocation2 + $0x2e0] ss:$16 sps:$4 sm:$0xff]  }
  0x29   : > { %462 = vmatprep.subr.mxu0 %v346_v11  ;;  %697 = vmatprep.subr.mxu1 %v570_v46  ;;  %v2798_v49 = vld [vmem:[#allocation2 + $0x2c4] ss:$16 sps:$4 sm:$0xff]   ;;  %v2796_v52 = vld [vmem:[#allocation2 + $0x2c0] ss:$16 sps:$4 sm:$0xff]  }
  0x2a   : > { %378 = vperm.xlu1 %2792, %v356_v8   ;;  %375 = vperm.xlu0 %2791, %v355_v9   ;;  %v2801_v53 = vld [vmem:[#allocation2 + $0x2a4] ss:$16 sps:$4 sm:$0xff]   ;;  %v2799_v56 = vld [vmem:[#allocation2 + $0x2a0] ss:$16 sps:$4 sm:$0xff]   ;;  %v558_v9 = vld [vmem:[%s3472_s2 + $0x98] sm:$0xff] }
  0x2b   : > { %v2804_v57 = vld [vmem:[#allocation2 + $0x284] ss:$16 sps:$4 sm:$0xff]   ;;  %v2802_v60 = vld [vmem:[#allocation2 + $0x280] ss:$16 sps:$4 sm:$0xff]  }
  0x2c   : > { %463 = vmatpush1.xpose.msra.mxu0 %v345_v12  ;;  %v2810_v61 = vld [vmem:[#allocation2 + $0x264] ss:$16 sps:$4 sm:$0xff]   ;;  %v2808_v1 = vld [vmem:[#allocation2 + $0x260] ss:$16 sps:$4 sm:$0xff]   ;;  %v552_v12 = vld [vmem:[%s3472_s2 + $0x68] sm:$0xff] }
  0x2d   : > { %464 = vmatprep.subr.mxu0 %v344_v15  ;;  %v557_v10 = vld [vmem:[%s3472_s2 + $0x90] sm:$0xff] }
  0x2e   : > { %384 = vperm.xlu1 %2792, %v358_v13   ;;  %381 = vperm.xlu0 %2791, %v357_v14   ;;  %v2826_v38 = vld [vmem:[#allocation2 + $0x200] ss:$16 sps:$4 sm:$0xff]   ;;  %v2831_v39 = vld [vmem:[#allocation2 + $0x64] ss:$16 sps:$4 sm:$0xff]  }
  0x2f   : > { %v2834_v40 = vld [vmem:[#allocation2 + $0x3e4] ss:$16 sps:$4 sm:$0xff]   ;;  %v2829_v41 = vld [vmem:[#allocation2 + $0x60] ss:$16 sps:$4 sm:$0xff]  }
  0x30   : > { %465 = vmatpush1.xpose.msra.mxu0 %v343_v16  ;;  %v2832_v42 = vld [vmem:[#allocation2 + $0x3e0] ss:$16 sps:$4 sm:$0xff]   ;;  %v2837_v43 = vld [vmem:[#allocation2 + $0x44] ss:$16 sps:$4 sm:$0xff]  }
  0x31   : > { %887 = vmatprep.subr.mxu0 %v554_v17  ;;  %v551_v17 = vld [vmem:[%s3472_s2 + $0x60] sm:$0xff] }
  0x32   : > { %v2840_v44 = vld [vmem:[#allocation2 + $0x3c4] ss:$16 sps:$4 sm:$0xff]   ;;  %v2835_v45 = vld [vmem:[#allocation2 + $0x40] ss:$16 sps:$4 sm:$0xff]  }
  0x33   : > { %v2838_v46 = vld [vmem:[#allocation2 + $0x3c0] ss:$16 sps:$4 sm:$0xff]  }
  0x9d   : > { %v364_v21 = vpop.permute.xlu0 %363  ;;  %v370_v26 = vpop.permute.xlu1 %369 }
  0x9e   : > { %vm386_vm0 = vcmp.eq.s32.totalorder %v364_v21, %v360_v19  ;;  %vm387_vm1 = vcmp.eq.s32.totalorder %v364_v21, %v361_v20  ;;  %vm391_vm2 = vcmp.eq.s32.totalorder %v370_v26, %v361_v20  ;;  %vm390_vm5 = vcmp.eq.s32.totalorder %v370_v26, %v360_v19  ;;  %v544_v21 = vld [vmem:[%s3472_s2 + $0x28] sm:$0xff]  ;;  %v2805_v26 = vld [vmem:[#allocation2 + $0xe0] ss:$16 sps:$4 sm:$0xff]  }
  0x9f   : > { %2514 = vmatprep.mubr.msk.f32.mxu0 %vm387_vm1, %v3059_v23 }
  0xa0   : > { %2515 = vmatmul.mubr.msk.f32.vlgmr.msra.gmra.mxu0 %vm386_vm0, %v3059_v23  ;;  %vm571_vm0 = vcmask 261120  }
  0xa1   : > { %v367_v27 = vpop.permute.xlu0 %366  ;;  %888 = vmatpush1.msra.mxu0 %v553_v22  ;;  %v373_v31 = vpop.permute.xlu1 %372  ;;  %v543_v22 = vld [vmem:[%s3472_s2 + $0x20] sm:$0xff] }
  0xa2   : > { %vm388_vm3 = vcmp.eq.s32.totalorder %v367_v27, %v360_v19  ;;  %vm389_vm4 = vcmp.eq.s32.totalorder %v367_v27, %v361_v20  ;;  %889 = vmatprep.subr.mxu0 %v550_v24  ;;  %vm393_vm6 = vcmp.eq.s32.totalorder %v373_v31, %v361_v20  ;;  %vm392_vm7 = vcmp.eq.s32.totalorder %v373_v31, %v360_v19  ;;  %v539_v24 = vld [vmem:[%s3472_s2] sm:$0xff] }
  0xa3   : > { %2516 = vmatprep.mubr.msk.f32.mxu0 %vm389_vm4, %v3059_v23  ;;  %890 = vmatpush1.msra.mxu0 %v549_v25  ;;  %v2807_v25 = vld [vmem:[#allocation2 + $0xe4] ss:$16 sps:$4 sm:$0xff]  }
  0xa4   : > { %2517 = vmatmul.mubr.msk.f32.gmra.mxu0 %vm388_vm3, %v3059_v23  ;;  %891 = vmatprep.subr.mxu0 %v546_v28  ;;  %v2813_v27 = vld [vmem:[#allocation2 + $0xc4] ss:$16 sps:$4 sm:$0xff]  }
  0xa5   : > { %2518 = vmatprep.mubr.msk.f32.mxu0 %vm391_vm2, %v3059_v23  ;;  %892 = vmatpush1.msra.mxu0 %v545_v29  ;;  %v376_v32 = vpop.permute.xlu0 %375  ;;  %v379_v33 = vpop.permute.xlu1 %378  ;;  %v2816_v28 = vld [vmem:[#allocation2 + $0x244] ss:$16 sps:$4 sm:$0xff]   ;;  %v2811_v29 = vld [vmem:[#allocation2 + $0xc0] ss:$16 sps:$4 sm:$0xff]  }
  0xa6   : > { %893 = vmatprep.subr.mxu0 %v542_v30  ;;  %vm395_vm8 = vcmp.eq.s32.totalorder %v376_v32, %v361_v20  ;;  %vm394_vm9 = vcmp.eq.s32.totalorder %v376_v32, %v360_v19  ;;  %vm397_vm10 = vcmp.eq.s32.totalorder %v379_v33, %v361_v20  ;;  %vm396_vm11 = vcmp.eq.s32.totalorder %v379_v33, %v360_v19  ;;  %v2814_v30 = vld [vmem:[#allocation2 + $0x240] ss:$16 sps:$4 sm:$0xff]   ;;  %v2819_v31 = vld [vmem:[#allocation2 + $0xa4] ss:$16 sps:$4 sm:$0xff]  }
  0xa7   : > { %894 = vmatpush1.msra.mxu0 %v541_v36  ;;  %v2822_v32 = vld [vmem:[#allocation2 + $0x224] ss:$16 sps:$4 sm:$0xff]   ;;  %v2817_v33 = vld [vmem:[#allocation2 + $0xa0] ss:$16 sps:$4 sm:$0xff]  }
  0xa8   : > { %2519 = vmatmul.mubr.msk.f32.gmra.mxu0 %vm390_vm5, %v3059_v23  ;;  %1857 = vmatprep.subr.bf16.mxu0 %v2795_v47  ;;  %v2828_v36 = vld [vmem:[#allocation2 + $0x204] ss:$16 sps:$4 sm:$0xff]  }
  0xa9   : > { %2520 = vmatprep.mubr.msk.f32.mxu0 %vm393_vm6, %v3059_v23  ;;  %v382_v34 = vpop.permute.xlu0 %381  ;;  %v385_v35 = vpop.permute.xlu1 %384  ;;  %v2843_v47 = vld [vmem:[#allocation2 + $0x24] ss:$16 sps:$4 sm:$0xff]  }
  0xaa   : > { %vm399_vm12 = vcmp.eq.s32.totalorder %v382_v34, %v361_v20  ;;  %vm398_vm13 = vcmp.eq.s32.totalorder %v382_v34, %v360_v19  ;;  %vm401_vm14 = vcmp.eq.s32.totalorder %v385_v35, %v361_v20  ;;  %vm400_vm15 = vcmp.eq.s32.totalorder %v385_v35, %v360_v19  ;;  %v548_v19 = vld [vmem:[%s3472_s2 + $0x48] sm:$0xff]  ;;  %v547_v20 = vld [vmem:[%s3472_s2 + $0x40] sm:$0xff] }
  0xab   : > { %v2820_v34 = vld [vmem:[#allocation2 + $0x220] ss:$16 sps:$4 sm:$0xff]   ;;  %v2825_v35 = vld [vmem:[#allocation2 + $0x84] ss:$16 sps:$4 sm:$0xff]  }
  0xac   : > { %2521 = vmatmul.mubr.msk.f32.gmra.mxu0 %vm392_vm7, %v3059_v23 }
  0xad   : > { %2522 = vmatprep.mubr.msk.f32.mxu0 %vm395_vm8, %v3059_v23 }
  0xb0   : > { %2523 = vmatmul.mubr.msk.f32.gmra.mxu0 %vm394_vm9, %v3059_v23 }
  0xb1   : > { %2524 = vmatprep.mubr.msk.f32.mxu0 %vm397_vm10, %v3059_v23 }
  0xb4   : > { %2525 = vmatmul.mubr.msk.f32.gmra.mxu0 %vm396_vm11, %v3059_v23 }
  0xb5   : > { %2526 = vmatprep.mubr.msk.f32.mxu0 %vm399_vm12, %v3059_v23 }
  0xb8   : > { %2527 = vmatmul.mubr.msk.f32.gmra.mxu0 %vm398_vm13, %v3059_v23 }
  0xb9   : > { %2528 = vmatprep.mubr.msk.f32.mxu0 %vm401_vm14, %v3059_v23 }
  0xbc   : > { %2529 = vmatmul.mubr.msk.f32.gmra.mxu0 %vm400_vm15, %v3059_v23  ;;  %v540_v23 = vld [vmem:[%s3472_s2 + $0x8] sm:$0xff] }
  0xbd   : > { %927 = vmatprep.mubr.f32.mxu0 %v3060_v37 }
 0x160   : > { %v3196_v50 = vpop.f32.mrf.mxu0 }
 0x161   : > { %2542 = vmatmul.mubr.msk.f32.vlgmr.msra.gmra.mxu0 %vm571_vm0, %v3196_v50 }
 0x162   : > { %v502_v51 = vpop.f32.mrf.mxu0  ;;  %933 = vmatprep.mubr.f32.mxu0 %v3060_v37  ;;  %1858 = vmatpush1.bf16.msra.mxu0 %v2793_v48  ;;  %v2846_v48 = vld [vmem:[#allocation2 + $0x3a4] ss:$16 sps:$4 sm:$0xff]  }
 0x163   : > { %1859 = vmatprep.subr.bf16.mxu0 %v2798_v49  ;;  %v2841_v49 = vld [vmem:[#allocation2 + $0x20] ss:$16 sps:$4 sm:$0xff]   ;;  %v2849_v51 = vld [vmem:[#allocation2 + $0x4] ss:$16 sps:$4 sm:$0xff]  }
 0x164   : > { %v3201_v54 = vpop.f32.mrf.mxu0 }
 0x165   : > { %2543 = vmatmul.mubr.msk.f32.gmra.mxu0 %vm571_vm0, %v3201_v54 }
 0x166   : > { %v507_v55 = vpop.f32.mrf.mxu0  ;;  %939 = vmatprep.mubr.f32.mxu0 %v3060_v37  ;;  %1860 = vmatpush1.bf16.msra.mxu0 %v2796_v52  ;;  %v2852_v52 = vld [vmem:[#allocation2 + $0x384] ss:$16 sps:$4 sm:$0xff]  }
 0x167   : > { %1861 = vmatprep.subr.bf16.mxu0 %v2801_v53  ;;  %v2847_v53 = vld [vmem:[#allocation2] ss:$16 sps:$4 sm:$0xff]   ;;  %v2855_v55 = vld [vmem:[#allocation2 + $0x1e4] ss:$16 sps:$4 sm:$0xff]  }
 0x168   : > { %v3206_v58 = vpop.f32.mrf.mxu0 }
 0x169   : > { %2544 = vmatmul.mubr.msk.f32.gmra.mxu0 %vm571_vm0, %v3206_v58 }
 0x16a   : > { %v512_v59 = vpop.f32.mrf.mxu0  ;;  %945 = vmatprep.mubr.f32.mxu0 %v3060_v37  ;;  %1862 = vmatpush1.bf16.msra.mxu0 %v2799_v56  ;;  %v2858_v56 = vld [vmem:[#allocation2 + $0x364] ss:$16 sps:$4 sm:$0xff]  }
 0x16b   : > { %1863 = vmatprep.subr.bf16.mxu0 %v2804_v57  ;;  %v2853_v57 = vld [vmem:[#allocation2 + $0x1e0] ss:$16 sps:$4 sm:$0xff]   ;;  %v2861_v59 = vld [vmem:[#allocation2 + $0x1c4] ss:$16 sps:$4 sm:$0xff]  }
 0x16c   : > { %v3211_v62 = vpop.f32.mrf.mxu0 }
 0x16d   : > { %2545 = vmatmul.mubr.msk.f32.gmra.mxu0 %vm571_vm0, %v3211_v62 }
 0x16e   : > { %v517_v63 = vpop.f32.mrf.mxu0  ;;  %1864 = vmatpush1.bf16.msra.mxu0 %v2802_v60  ;;  %v2864_v60 = vld [vmem:[#allocation2 + $0x344] ss:$16 sps:$4 sm:$0xff]  }
 0x16f   : > { %1865 = vmatprep.subr.bf16.mxu0 %v2810_v61  ;;  %v2859_v61 = vld [vmem:[#allocation2 + $0x1c0] ss:$16 sps:$4 sm:$0xff]   ;;  %v2867_v63 = vld [vmem:[#allocation2 + $0x1a4] ss:$16 sps:$4 sm:$0xff]  }
 0x170   : > { %v520_v2 = vpop.f32.mrf.mxu0 }
 0x171   : > { %2530 = vmatmul.mubr.msk.f32.vlgmr.msra.gmra.mxu1 %vm571_vm0, %v520_v2 }
 0x172   : > { %698 = vmatpush1.msra.mxu1 %v569_v0  ;;  %v522_v5 = vpop.f32.mrf.mxu0  ;;  %654 = vmatprep.mubr.f32.mxu1 %v3060_v37  ;;  %v2870_v0 = vld [vmem:[#allocation2 + $0x324] ss:$16 sps:$4 sm:$0xff]  }
 0x173   : > { %699 = vmatprep.subr.mxu1 %v566_v3  ;;  %1866 = vmatpush1.bf16.msra.mxu0 %v2808_v1  ;;  %v2865_v1 = vld [vmem:[#allocation2 + $0x1a0] ss:$16 sps:$4 sm:$0xff]   ;;  %v2873_v3 = vld [vmem:[#allocation2 + $0x184] ss:$16 sps:$4 sm:$0xff]  }
 0x174   : > { %v525_v8 = vpop.f32.mrf.mxu0  ;;  %700 = vmatpush1.msra.mxu1 %v565_v4  ;;  %1867 = vmatprep.subr.bf16.mxu0 %v2816_v28  ;;  %v2876_v4 = vld [vmem:[#allocation2 + $0x304] ss:$16 sps:$4 sm:$0xff]   ;;  %v2871_v5 = vld [vmem:[#allocation2 + $0x180] ss:$16 sps:$4 sm:$0xff]   ;;  %v3302_v28 = vshrl.u32 %v359_v18, 7 }
 0x175   : > { %2531 = vmatmul.mubr.msk.f32.gmra.mxu1 %vm571_vm0, %v525_v8  ;;  %701 = vmatprep.subr.mxu1 %v562_v6  ;;  %v2874_v6 = vld [vmem:[#allocation2 + $0x300] ss:$16 sps:$4 sm:$0xff]  }
 0x176   : > { %v527_v11 = vpop.f32.mrf.mxu0  ;;  %660 = vmatprep.mubr.f32.mxu1 %v3060_v37  ;;  %702 = vmatpush1.msra.mxu1 %v561_v7  ;;  %v2879_v7 = vld [vmem:[#allocation2 + $0x164] ss:$16 sps:$4 sm:$0xff]  }
 0x177   : > { %703 = vmatprep.subr.mxu1 %v558_v9  ;;  %1868 = vmatpush1.bf16.msra.mxu0 %v2814_v30  ;;  %v2877_v9 = vld [vmem:[#allocation2 + $0x160] ss:$16 sps:$4 sm:$0xff]  }
 0x178   : > { %v530_v13 = vpop.f32.mrf.mxu0  ;;  %704 = vmatpush1.msra.mxu1 %v557_v10  ;;  %1869 = vmatprep.subr.bf16.mxu0 %v2822_v32  ;;  %v2885_v10 = vld [vmem:[#allocation2 + $0x144] ss:$16 sps:$4 sm:$0xff]   ;;  %v2883_v11 = vld [vmem:[#allocation2 + $0x140] ss:$16 sps:$4 sm:$0xff]  }
 0x179   : > { %2532 = vmatmul.mubr.msk.f32.gmra.mxu1 %vm571_vm0, %v530_v13  ;;  %798 = vmatprep.subr.mxu1 %v552_v12  ;;  %v2891_v12 = vld [vmem:[#allocation2 + $0x124] ss:$16 sps:$4 sm:$0xff]  }
 0x17a   : > { %v532_v14 = vpop.f32.mrf.mxu0  ;;  %666 = vmatprep.mubr.f32.mxu1 %v3060_v37 }
 0x17b   : > { %1870 = vmatpush1.bf16.msra.mxu0 %v2820_v34  ;;  %v2897_v14 = vld [vmem:[#allocation2 + $0x104] ss:$16 sps:$4 sm:$0xff]   ;;  %v952_v34 = vld [vmem:[%s3473_s3] sm:$0xf] }
 0x17c   : > { %v535_v15 = vpop.f32.mrf.mxu0  ;;  %1871 = vmatprep.subr.bf16.mxu0 %v2828_v36 }
 0x17d   : > { %2533 = vmatmul.mubr.msk.f32.gmra.mxu1 %vm571_vm0, %v535_v15 }
 0x17e   : > { %v537_v16 = vpop.f32.mrf.mxu0  ;;  %737 = vmatprep.mubr.f32.mxu1 %v3060_v37 }
 0x17f   : > { %1872 = vmatpush1.bf16.msra.mxu0 %v2826_v38  ;;  %v2903_v16 = vld [vmem:[#allocation2 + $0xec] ss:$16 sps:$4 sm:$0xff]  }
 0x180   : > { %1873 = vmatprep.subr.bf16.mxu0 %v2834_v40 }
 0x181   : > { %2534 = vmatmul.mubr.msk.f32.vlgmr.msra.gmra.mxu1 %vm571_vm0, %v520_v2  ;;  %v2868_v2 = vld [vmem:[#allocation2 + $0x320] ss:$16 sps:$4 sm:$0xff]  }
 0x182   : > { %799 = vmatpush1.msra.mxu1 %v551_v17  ;;  %743 = vmatprep.mubr.f32.mxu1 %v3060_v37 }
 0x183   : > { %800 = vmatprep.subr.mxu1 %v548_v19  ;;  %1874 = vmatpush2.bf16.msra.mxu0 %v2832_v42 }
 0x184   : > { %801 = vmatpush1.msra.mxu1 %v547_v20  ;;  %1875 = vmatprep.subr.bf16.mxu0 %v2840_v44 }
 0x185   : > { %2535 = vmatmul.mubr.msk.f32.gmra.mxu1 %vm571_vm0, %v525_v8  ;;  %802 = vmatprep.subr.mxu1 %v544_v21  ;;  %v2882_v8 = vld [vmem:[#allocation2 + $0x2ec] ss:$16 sps:$4 sm:$0xff]  }
 0x186   : > { %749 = vmatprep.mubr.f32.mxu1 %v3060_v37  ;;  %803 = vmatpush1.msra.mxu1 %v543_v22 }
 0x187   : > { %804 = vmatprep.subr.mxu1 %v540_v23  ;;  %1876 = vmatpush2.bf16.msra.mxu0 %v2838_v46 }
 0x188   : > { %805 = vmatpush1.msra.mxu1 %v539_v24  ;;  %1877 = vmatprep.subr.bf16.mxu0 %v2846_v48 }
 0x189   : > { %2536 = vmatmul.mubr.msk.f32.gmra.mxu1 %vm571_vm0, %v530_v13  ;;  %1804 = vmatprep.subr.bf16.mxu1 %v2807_v25  ;;  %v2889_v13 = vld [vmem:[#allocation2 + $0x120] ss:$16 sps:$4 sm:$0xff]  }
 0x18a   : > { %755 = vmatprep.mubr.f32.mxu1 %v3060_v37 }
 0x18d   : > { %2537 = vmatmul.mubr.msk.f32.gmra.mxu1 %vm571_vm0, %v535_v15  ;;  %v2895_v15 = vld [vmem:[#allocation2 + $0x100] ss:$16 sps:$4 sm:$0xff]  }
 0x18e   : > { %838 = vmatprep.mubr.f32.mxu1 %v3060_v37 }
 0x191   : > { %2538 = vmatmul.mubr.msk.f32.vlgmr.msra.gmra.mxu1 %vm571_vm0, %v3196_v50  ;;  %v2844_v50 = vld [vmem:[#allocation2 + $0x3a0] ss:$16 sps:$4 sm:$0xff]  }
 0x192   : > { %844 = vmatprep.mubr.f32.mxu1 %v3060_v37  ;;  %1805 = vmatpush1.bf16.msra.mxu1 %v2805_v26 }
 0x193   : > { %1806 = vmatprep.subr.bf16.mxu1 %v2813_v27  ;;  %1878 = vmatpush2.bf16.msra.mxu0 %v2844_v50 }
 0x194   : > { %1879 = vmatprep.subr.bf16.mxu0 %v2852_v52 }
 0x195   : > { %2539 = vmatmul.mubr.msk.f32.gmra.mxu1 %vm571_vm0, %v3201_v54  ;;  %v2850_v54 = vld [vmem:[#allocation2 + $0x380] ss:$16 sps:$4 sm:$0xff]  }
 0x196   : > { %850 = vmatprep.mubr.f32.mxu1 %v3060_v37  ;;  %1807 = vmatpush1.bf16.msra.mxu1 %v2811_v29 }
 0x197   : > { %1808 = vmatprep.subr.bf16.mxu1 %v2819_v31  ;;  %1880 = vmatpush2.bf16.msra.mxu0 %v2850_v54  ;;  %v968_v31 = vsub.s32 3, %v3302_v28 }
 0x198   : > { %1881 = vmatprep.subr.bf16.mxu0 %v2858_v56 }
 0x199   : > { %2540 = vmatmul.mubr.msk.f32.gmra.mxu1 %vm571_vm0, %v3206_v58  ;;  %v2856_v58 = vld [vmem:[#allocation2 + $0x360] ss:$16 sps:$4 sm:$0xff]   ;;  %v969_v38 = vrot.slane %v952_v34, %v968_v31 }
 0x19a   : > { %856 = vmatprep.mubr.f32.mxu1 %v3060_v37  ;;  %1809 = vmatpush1.bf16.msra.mxu1 %v2817_v33  ;;  %v2823_v37 = vld [vmem:[#allocation2 + $0x80] ss:$16 sps:$4 sm:$0xff]   ;;  %v964_v33 = vsub.s32 2, %v3302_v28 }
 0x19b   : > { %1810 = vmatprep.subr.bf16.mxu1 %v2825_v35  ;;  %1882 = vmatpush2.bf16.msra.mxu0 %v2856_v58 }
 0x19c   : > { %1883 = vmatprep.subr.bf16.mxu0 %v2864_v60 }
 0x19d   : > { %2541 = vmatmul.mubr.msk.f32.gmra.mxu1 %vm571_vm0, %v3211_v62  ;;  %v2862_v62 = vld [vmem:[#allocation2 + $0x340] ss:$16 sps:$4 sm:$0xff]  }
 0x19e   : > { %1811 = vmatpush1.bf16.msra.mxu1 %v2823_v37 }
 0x19f   : > { %1812 = vmatprep.subr.bf16.mxu1 %v2831_v39  ;;  %1884 = vmatpush2.bf16.msra.mxu0 %v2862_v62  ;;  %v965_v39 = vrot.slane %v952_v34, %v964_v33 }
 0x1a0   : > { %1885 = vmatprep.subr.bf16.mxu0 %v2870_v0 }
 0x1a2   : > { %1813 = vmatpush1.bf16.msra.mxu1 %v2829_v41 }
 0x1a3   : > { %1814 = vmatprep.subr.bf16.mxu1 %v2837_v43  ;;  %1886 = vmatpush2.bf16.msra.mxu0 %v2868_v2 }
 0x1a4   : > { %1887 = vmatprep.subr.bf16.mxu0 %v2876_v4 }
 0x1a6   : > { %1815 = vmatpush1.bf16.msra.mxu1 %v2835_v45 }
 0x1a7   : > { %1816 = vmatprep.subr.bf16.mxu1 %v2843_v47  ;;  %1888 = vmatpush2.bf16.msra.mxu0 %v2874_v6 }
 0x1a8   : > { %1963 = vmatprep.subr.bf16.mxu0 %v2882_v8  ;;  %v956_v8 = vsub.s32 0, %v3302_v28 }
 0x1aa   : > { %1817 = vmatpush1.bf16.msra.mxu1 %v2841_v49 }
 0x1ab   : > { %1818 = vmatprep.subr.bf16.mxu1 %v2849_v51 }
 0x1ae   : > { %1819 = vmatpush1.bf16.msra.mxu1 %v2847_v53 }
 0x1af   : > { %1820 = vmatprep.subr.bf16.mxu1 %v2855_v55 }
 0x1b2   : > { %1821 = vmatpush2.bf16.msra.mxu1 %v2853_v57 }
 0x1b3   : > { %1822 = vmatprep.subr.bf16.mxu1 %v2861_v59 }
 0x1b6   : > { %1823 = vmatpush2.bf16.msra.mxu1 %v2859_v61  ;;  %v2880_v61 = vld [vmem:[#allocation2 + $0x2e8] ss:$16 sps:$4 sm:$0xff]  }
 0x1b7   : > { %1824 = vmatprep.subr.bf16.mxu1 %v2867_v63 }
 0x1ba   : > { %1825 = vmatpush2.bf16.msra.mxu1 %v2865_v1  ;;  %v2888_v1 = vld [vmem:[#allocation2 + $0x2cc] ss:$16 sps:$4 sm:$0xff]  }
 0x1bb   : > { %1826 = vmatprep.subr.bf16.mxu1 %v2873_v3 }
 0x1be   : > { %1827 = vmatpush2.bf16.msra.mxu1 %v2871_v5  ;;  %v960_v5 = vsub.s32 1, %v3302_v28 }
 0x1bf   : > { %1828 = vmatprep.subr.bf16.mxu1 %v2879_v7 }
 0x1c2   : > { %1829 = vmatpush2.bf16.msra.mxu1 %v2877_v9 }
 0x1c3   : > { %1830 = vmatprep.subr.bf16.mxu1 %v2885_v10  ;;  %v2886_v10 = vld [vmem:[#allocation2 + $0x2c8] ss:$16 sps:$4 sm:$0xff]  }
 0x1c6   : > { %1831 = vmatpush2.bf16.msra.mxu1 %v2883_v11 }
 0x1c7   : > { %1832 = vmatprep.subr.bf16.mxu1 %v2891_v12 }
 0x1ca   : > { %1833 = vmatpush2.bf16.msra.mxu1 %v2889_v13  ;;  %v2894_v13 = vld [vmem:[#allocation2 + $0x2ac] ss:$16 sps:$4 sm:$0xff]  }
 0x1cb   : > { %1834 = vmatprep.subr.bf16.mxu1 %v2897_v14 }
 0x1ce   : > { %1835 = vmatpush2.bf16.msra.mxu1 %v2895_v15 }
 0x1cf   : > { %1910 = vmatprep.subr.bf16.mxu1 %v2903_v16 }
 0x221   : > { %v929_v19 = vpop.f32.mrf.mxu0 }
 0x223   : > { %v931_v22 = vpop.f32.mrf.mxu0 }
 0x225   : > { %v935_v25 = vpop.f32.mrf.mxu0 }
 0x227   : > { %v937_v29 = vpop.f32.mrf.mxu0 }
 0x229   : > { %v941_v35 = vpop.f32.mrf.mxu0 }
 0x22b   : > { %v943_v42 = vpop.f32.mrf.mxu0 }
 0x22d   : > { %v947_v50 = vpop.f32.mrf.mxu0 }
 0x22f   : > { %v949_v62 = vpop.f32.mrf.mxu0 }
 0x231   : > { %v3287_v17 = vpop.f32.mrf.mxu1 }
 0x233   : > { %v3289_v20 = vpop.f32.mrf.mxu1 }
 0x235   : > { %v3291_v21 = vpop.f32.mrf.mxu1 }
 0x237   : > { %v3293_v23 = vpop.f32.mrf.mxu1 }
 0x239   : > { %v3295_v24 = vpop.f32.mrf.mxu1 }
 0x23b   : > { %v3297_v26 = vpop.f32.mrf.mxu1 }
 0x23d   : > { %v3299_v27 = vpop.f32.mrf.mxu1 }
 0x23f   : > { %v3304_v30 = vpop.f32.mrf.mxu1 }
 0x241   : > { %v739_v32 = vpop.f32.mrf.mxu1 }
 0x242   : > { %v930_v18 = vadd.f32 %v929_v19, %v739_v32  ;;  %v961_v19 = vrot.slane %v952_v34, %v960_v5 }
 0x243   : > { %v741_v36 = vpop.f32.mrf.mxu1 }
 0x244   : > { %v932_v37 = vadd.f32 %v931_v22, %v741_v36  ;;  %v976_v47 = vadd.f32 %v965_v39, %v930_v18 }
 0x245   : > { %v745_v40 = vpop.f32.mrf.mxu1 }
 0x246   : > { %v936_v41 = vadd.f32 %v935_v25, %v745_v40  ;;  %v977_v44 = vadd.f32 %v969_v38, %v932_v37  ;;  %v992_v56 = vmax.f32 %v976_v47, 0.0  ;;  %v2892_v37 = vld [vmem:[#allocation2 + $0x2a8] ss:$16 sps:$4 sm:$0xff]  }
 0x247   : > { %v747_v43 = vpop.f32.mrf.mxu1 }
 0x248   : > { %v980_v45 = vadd.f32 %v965_v39, %v936_v41  ;;  %v938_v46 = vadd.f32 %v937_v29, %v747_v43  ;;  %v993_v53 = vmax.f32 %v977_v44, 0.0  ;;  %v957_v29 = vrot.slane %v952_v34, %v956_v8 }
 0x249   : > { %v751_v48 = vpop.f32.mrf.mxu1 }
 0x24a   : > { %v981_v49 = vadd.f32 %v969_v38, %v938_v46  ;;  %v996_v51 = vmax.f32 %v980_v45, 0.0  ;;  %v942_v57 = vadd.f32 %v941_v35, %v751_v48  ;;  %v2906_v45 = vld [vmem:[#allocation2 + $0x26c] ss:$16 sps:$4 sm:$0xff]  }
 0x24b   : > { %v753_v52 = vpop.f32.mrf.mxu1 }
 0x24c   : > { %v997_v54 = vmax.f32 %v981_v49, 0.0  ;;  %v944_v55 = vadd.f32 %v943_v42, %v753_v52  ;;  %v3315_v63 = vpack.c.bf16 %v996_v51, %v992_v56  ;;  %v984_v6 = vadd.f32 %v965_v39, %v942_v57  ;;  %v2898_v42 = vld [vmem:[#allocation2 + $0x288] ss:$16 sps:$4 sm:$0xff]   ;;  %v2909_v57 = vld [vmem:[#allocation2 + $0xcc] ss:$16 sps:$4 sm:$0xff]  }
 0x24d   : > { %v757_v58 = vpop.f32.mrf.mxu1 }
 0x24e   : > { %v948_v59 = vadd.f32 %v947_v50, %v757_v58  ;;  %v1009_v60 = vpack.c.bf16 %v997_v54, %v993_v53  ;;  %v985_v2 = vadd.f32 %v969_v38, %v944_v55  ;;  %v1000_v22 = vmax.f32 %v984_v6, 0.0  ;;  %v2901_v53 = vld [vmem:[#allocation2 + $0xe8] ss:$16 sps:$4 sm:$0xff]   ;;  %v2912_v58 = vld [vmem:[#allocation2 + $0x24c] ss:$16 sps:$4 sm:$0xff]  }
 0x24f   : > { %v759_v0 = vpop.f32.mrf.mxu1  ;;  %v2904_v54 = vld [vmem:[#allocation2 + $0x268] ss:$16 sps:$4 sm:$0xff]  }
 0x250   : > { %v988_v3 = vadd.f32 %v965_v39, %v948_v59  ;;  %v950_v4 = vadd.f32 %v949_v62, %v759_v0  ;;  %1889 = vmatprep.mubr.bf16.mxu0 %v1009_v60  ;;  %v1001_v14 = vmax.f32 %v985_v2, 0.0  ;;  %v2910_v62 = vld [vmem:[#allocation2 + $0x248] ss:$16 sps:$4 sm:$0xff]   ;;  %v2918_v2 = vld [vmem:[#allocation2 + $0x22c] ss:$16 sps:$4 sm:$0xff]  }
 0x251   : > { %v840_v7 = vpop.f32.mrf.mxu1  ;;  %1890 = vmatmul.mubr.bf16.vlgmr.msra.gmra.mxu0 %v3315_v63 }
 0x252   : > { %v989_v9 = vadd.f32 %v969_v38, %v950_v4  ;;  %1964 = vmatpush1.bf16.msra.mxu0 %v2880_v61  ;;  %v1004_v11 = vmax.f32 %v988_v3, 0.0  ;;  %v841_v25 = vadd.f32 %v840_v7, %v3287_v17  ;;  %v2913_v7 = vld [vmem:[#allocation2 + $0xa8] ss:$16 sps:$4 sm:$0xff]  }
 0x253   : > { %v842_v12 = vpop.f32.mrf.mxu1  ;;  %1965 = vmatprep.subr.bf16.mxu0 %v2888_v1  ;;  %v2915_v1 = vld [vmem:[#allocation2 + $0xac] ss:$16 sps:$4 sm:$0xff]  }
 0x254   : > { %v1005_v15 = vmax.f32 %v989_v9, 0.0  ;;  %v843_v16 = vadd.f32 %v842_v12, %v3289_v20  ;;  %v3329_v18 = vpack.c.bf16 %v1004_v11, %v1000_v22  ;;  %v2900_v20 = vld [vmem:[#allocation2 + $0x28c] ss:$16 sps:$4 sm:$0xff]   ;;  %v974_v17 = vadd.f32 %v957_v29, %v841_v25  ;;  %v2916_v9 = vld [vmem:[#allocation2 + $0x228] ss:$16 sps:$4 sm:$0xff]  }
 0x255   : > { %v846_v32 = vpop.f32.mrf.mxu1  ;;  %v2921_v11 = vld [vmem:[#allocation2 + $0x8c] ss:$16 sps:$4 sm:$0xff]   ;;  %v2928_v22 = vld [vmem:[#allocation2 + $0x3e8] ss:$16 sps:$4 sm:$0xff]  }
 0x256   : > { %v847_v35 = vadd.f32 %v846_v32, %v3291_v21  ;;  %1966 = vmatpush1.bf16.msra.mxu0 %v2886_v10  ;;  %v3327_v36 = vpack.c.bf16 %v1005_v15, %v1001_v14  ;;  %v975_v39 = vadd.f32 %v961_v19, %v843_v16  ;;  %v990_v49 = vmax.f32 %v974_v17, 0.0  ;;  %v2924_v12 = vld [vmem:[#allocation2 + $0x20c] ss:$16 sps:$4 sm:$0xff]   ;;  %v2922_v14 = vld [vmem:[#allocation2 + $0x208] ss:$16 sps:$4 sm:$0xff]  }
 0x257   : > { %v848_v38 = vpop.f32.mrf.mxu1  ;;  %1967 = vmatprep.subr.bf16.mxu0 %v2894_v13  ;;  %v2919_v13 = vld [vmem:[#allocation2 + $0x88] ss:$16 sps:$4 sm:$0xff]   ;;  %v2927_v15 = vld [vmem:[#allocation2 + $0x6c] ss:$16 sps:$4 sm:$0xff]  }
 0x258   : > { %v978_v40 = vadd.f32 %v957_v29, %v847_v35  ;;  %v849_v41 = vadd.f32 %v848_v38, %v3293_v23  ;;  %1899 = vmatprep.mubr.bf16.mxu0 %v3327_v36  ;;  %v991_v46 = vmax.f32 %v975_v39, 0.0  ;;  %v2930_v16 = vld [vmem:[#allocation2 + $0x3ec] ss:$16 sps:$4 sm:$0xff]   ;;  %v2931_v32 = vld [vmem:[#allocation2 + $0x48] ss:$16 sps:$4 sm:$0xff]  }
 0x259   : > { %v852_v34 = vpop.f32.mrf.mxu1  ;;  %1900 = vmatmul.mubr.bf16.gmra.mxu0 %v3329_v18  ;;  %v2933_v25 = vld [vmem:[#allocation2 + $0x4c] ss:$16 sps:$4 sm:$0xff]   ;;  %v2934_v35 = vld [vmem:[#allocation2 + $0x3c8] ss:$16 sps:$4 sm:$0xff]  }
 0x25a   : > { %v979_v21 = vadd.f32 %v961_v19, %v849_v41  ;;  %1968 = vmatpush1.bf16.msra.mxu0 %v2892_v37  ;;  %1995 = vmatprep.mubr.bf16.mxu0 %v1009_v60  ;;  %v994_v43 = vmax.f32 %v978_v40, 0.0  ;;  %v853_v23 = vadd.f32 %v852_v34, %v3295_v24  ;;  %v2939_v37 = vld [vmem:[#allocation2 + $0x2c] ss:$16 sps:$4 sm:$0xff]   ;;  %v2940_v39 = vld [vmem:[#allocation2 + $0x3a8] ss:$16 sps:$4 sm:$0xff]  }
 0x25b   : > { %v854_v44 = vpop.f32.mrf.mxu1  ;;  %1969 = vmatprep.subr.bf16.mxu0 %v2900_v20  ;;  %v2942_v38 = vld [vmem:[#allocation2 + $0x3ac] ss:$16 sps:$4 sm:$0xff]   ;;  %v2937_v20 = vld [vmem:[#allocation2 + $0x28] ss:$16 sps:$4 sm:$0xff]  }
 0x25c   : > { %v995_v47 = vmax.f32 %v979_v21, 0.0  ;;  %v855_v48 = vadd.f32 %v854_v44, %v3297_v26  ;;  %v3337_v55 = vpack.c.bf16 %v994_v43, %v990_v49  ;;  %v982_v61 = vadd.f32 %v957_v29, %v853_v23  ;;  %v2945_v40 = vld [vmem:[#allocation2 + $0xc] ss:$16 sps:$4 sm:$0xff]   ;;  %v2943_v17 = vld [vmem:[#allocation2 + $0x8] ss:$16 sps:$4 sm:$0xff]  }
 0x25d   : > { %v858_v50 = vpop.f32.mrf.mxu1  ;;  %v2948_v41 = vld [vmem:[#allocation2 + $0x38c] ss:$16 sps:$4 sm:$0xff]   ;;  %v2946_v34 = vld [vmem:[#allocation2 + $0x388] ss:$16 sps:$4 sm:$0xff]  }
 0x25e   : > { %v859_v51 = vadd.f32 %v858_v50, %v3299_v27  ;;  %1970 = vmatpush1.bf16.msra.mxu0 %v2898_v42  ;;  %v1007_v52 = vpack.c.bf16 %v995_v47, %v991_v46  ;;  %v983_v59 = vadd.f32 %v961_v19, %v855_v48  ;;  %v2907_v27 = vld [vmem:[#allocation2 + $0xc8] ss:$16 sps:$4 sm:$0xff]   ;;  %v998_v6 = vmax.f32 %v982_v61, 0.0  ;;  %v2951_v21 = vld [vmem:[#allocation2 + $0x1ec] ss:$16 sps:$4 sm:$0xff]  }
 0x25f   : > { %v860_v56 = vpop.f32.mrf.mxu1  ;;  %1971 = vmatprep.subr.bf16.mxu0 %v2906_v45  ;;  %v2954_v42 = vld [vmem:[#allocation2 + $0x36c] ss:$16 sps:$4 sm:$0xff]   ;;  %v2949_v43 = vld [vmem:[#allocation2 + $0x1e8] ss:$16 sps:$4 sm:$0xff]  }
 0x260   : > { %v986_v60 = vadd.f32 %v957_v29, %v859_v51  ;;  %v861_v26 = vadd.f32 %v860_v56, %v3304_v30  ;;  %1836 = vmatprep.mubr.bf16.mxu1 %v1007_v52  ;;  %v999_v3 = vmax.f32 %v983_v59, 0.0  ;;  %v2936_v29 = vld [vmem:[#allocation2 + $0x3cc] ss:$16 sps:$4 sm:$0xff]   ;;  %v2952_v44 = vld [vmem:[#allocation2 + $0x368] ss:$16 sps:$4 sm:$0xff]  }
 0x261   : > { %1837 = vmatmul.mubr.bf16.vlgmr.msra.gmra.mxu1 %v3337_v55  ;;  %v2957_v45 = vld [vmem:[#allocation2 + $0x1cc] ss:$16 sps:$4 sm:$0xff]   ;;  %v2955_v47 = vld [vmem:[#allocation2 + $0x1c8] ss:$16 sps:$4 sm:$0xff]  }
 0x262   : > { %v987_v24 = vadd.f32 %v961_v19, %v861_v26  ;;  %1911 = vmatpush1.bf16.msra.mxu1 %v2901_v53  ;;  %1972 = vmatpush1.bf16.msra.mxu0 %v2904_v54  ;;  %v1002_v0 = vmax.f32 %v986_v60, 0.0  ;;  %v2925_v19 = vld [vmem:[#allocation2 + $0x68] ss:$16 sps:$4 sm:$0xff]   ;;  %v2960_v46 = vld [vmem:[#allocation2 + $0x34c] ss:$16 sps:$4 sm:$0xff]  }
 0x263   : > { %1912 = vmatprep.subr.bf16.mxu1 %v2909_v57  ;;  %1973 = vmatprep.subr.bf16.mxu0 %v2912_v58  ;;  %v2958_v48 = vld [vmem:[#allocation2 + $0x348] ss:$16 sps:$4 sm:$0xff]   ;;  %v2963_v49 = vld [vmem:[#allocation2 + $0x1ac] ss:$16 sps:$4 sm:$0xff]  }
 0x264   : > { %v1003_v4 = vmax.f32 %v987_v24, 0.0  ;;  %v3343_v10 = vpack.c.bf16 %v1002_v0, %v998_v6  ;;  %v2966_v23 = vld [vmem:[#allocation2 + $0x32c] ss:$16 sps:$4 sm:$0xff]   ;;  %v2961_v50 = vld [vmem:[#allocation2 + $0x1a8] ss:$16 sps:$4 sm:$0xff]   ;;  %v2995_v6 = vld [vmem:[%s3476_s6 + $0x50] sm:$0xff]  }
 0x265   : > { %v2964_v51 = vld [vmem:[#allocation2 + $0x328] ss:$16 sps:$4 sm:$0xff]   ;;  %v2972_v53 = vld [vmem:[#allocation2 + $0x30c] ss:$16 sps:$4 sm:$0xff]  }
 0x266   : > { %1913 = vmatpush1.bf16.msra.mxu1 %v2907_v27  ;;  %1974 = vmatpush1.bf16.msra.mxu0 %v2910_v62  ;;  %v3341_v30 = vpack.c.bf16 %v1003_v4, %v999_v3  ;;  %v2967_v54 = vld [vmem:[#allocation2 + $0x188] ss:$16 sps:$4 sm:$0xff]   ;;  %v2975_v57 = vld [vmem:[#allocation2 + $0x16c] ss:$16 sps:$4 sm:$0xff]  }
 0x267   : > { %1914 = vmatprep.subr.bf16.mxu1 %v2915_v1  ;;  %1975 = vmatprep.subr.bf16.mxu0 %v2918_v2  ;;  %v2970_v56 = vld [vmem:[#allocation2 + $0x308] ss:$16 sps:$4 sm:$0xff]   ;;  %v2978_v59 = vld [vmem:[#allocation2 + $0x14c] ss:$16 sps:$4 sm:$0xff]   ;;  %v2992_v2 = vld [vmem:[%s3476_s6 + $0x20] sm:$0xff]  }
 0x268   : > { %1846 = vmatprep.mubr.bf16.mxu1 %v3341_v30  ;;  %v2973_v58 = vld [vmem:[#allocation2 + $0x168] ss:$16 sps:$4 sm:$0xff]   ;;  %v2981_v26 = vld [vmem:[#allocation2 + $0x12c] ss:$16 sps:$4 sm:$0xff]  }
 0x269   : > { %1847 = vmatmul.mubr.bf16.gmra.mxu1 %v3343_v10  ;;  %v2976_v60 = vld [vmem:[#allocation2 + $0x148] ss:$16 sps:$4 sm:$0xff]   ;;  %v2984_v24 = vld [vmem:[#allocation2 + $0x10c] ss:$16 sps:$4 sm:$0xff]  }
 0x26a   : > { %1915 = vmatpush1.bf16.msra.mxu1 %v2913_v7  ;;  %1976 = vmatpush1.bf16.msra.mxu0 %v2916_v9  ;;  %v2979_v61 = vld [vmem:[#allocation2 + $0x128] ss:$16 sps:$4 sm:$0xff]  }
 0x26b   : > { %1942 = vmatprep.mubr.bf16.mxu1 %v1007_v52  ;;  %1916 = vmatprep.subr.bf16.mxu1 %v2921_v11  ;;  %v2969_v52 = vld [vmem:[#allocation2 + $0x18c] ss:$16 sps:$4 sm:$0xff]   ;;  %v2982_v27 = vld [vmem:[#allocation2 + $0x108] ss:$16 sps:$4 sm:$0xff]   ;;  %v3000_v11 = vld [vmem:[%s3476_s6] sm:$0xff]  }
 0x26c   : > { %1977 = vmatprep.subr.bf16.mxu0 %v2924_v12  ;;  %v2985_v62 = vld [vmem:[%s3476_s6 + $0x78] sm:$0xff]   ;;  %v2989_v0 = vld [vmem:[%s3476_s6 + $0x68] sm:$0xff]  }
 0x26d   : > { %v2990_v1 = vld [vmem:[%s3476_s6 + $0x28] sm:$0xff]   ;;  %v2993_v3 = vld [vmem:[%s3476_s6 + $0x58] sm:$0xff]  }
 0x26e   : > { %1917 = vmatpush1.bf16.msra.mxu1 %v2919_v13  ;;  %1978 = vmatpush1.bf16.msra.mxu0 %v2922_v14  ;;  %v2994_v4 = vld [vmem:[%s3476_s6 + $0x18] sm:$0xff]   ;;  %v2997_v7 = vld [vmem:[%s3476_s6 + $0x48] sm:$0xff]   ;;  %v3003_v14 = vld [vmem:[%s3476_s6 + $0xf0] sm:$0xff]  }
 0x26f   : > { %1918 = vmatprep.subr.bf16.mxu1 %v2927_v15  ;;  %1979 = vmatprep.subr.bf16.mxu0 %v2930_v16  ;;  %v2998_v9 = vld [vmem:[%s3476_s6 + $0x8] sm:$0xff]   ;;  %v3001_v12 = vld [vmem:[%s3476_s6 + $0xf8] sm:$0xff]   ;;  %v3004_v15 = vld [vmem:[%s3476_s6 + $0xb0] sm:$0xff]  }
 0x270   : > { %v3002_v13 = vld [vmem:[%s3476_s6 + $0xb8] sm:$0xff]   ;;  %v3005_v16 = vld [vmem:[%s3476_s6 + $0xe8] sm:$0xff]  }
 0x272   : > { %1919 = vmatpush1.bf16.msra.mxu1 %v2925_v19  ;;  %1980 = vmatpush2.bf16.msra.mxu0 %v2928_v22  ;;  %v3006_v19 = vld [vmem:[%s3476_s6 + $0xa8] sm:$0xff]   ;;  %v3007_v22 = vld [vmem:[%s3476_s6 + $0xe0] sm:$0xff]  }
 0x273   : > { %1920 = vmatprep.subr.bf16.mxu1 %v2933_v25  ;;  %1981 = vmatprep.subr.bf16.mxu0 %v2936_v29  ;;  %v3008_v25 = vld [vmem:[%s3476_s6 + $0xa0] sm:$0xff]   ;;  %v3009_v29 = vld [vmem:[%s3476_s6 + $0xd8] sm:$0xff]  }
 0x276   : > { %1921 = vmatpush1.bf16.msra.mxu1 %v2931_v32  ;;  %1982 = vmatpush2.bf16.msra.mxu0 %v2934_v35  ;;  %v3010_v32 = vld [vmem:[%s3476_s6 + $0x98] sm:$0xff]   ;;  %v3011_v35 = vld [vmem:[%s3476_s6 + $0xd0] sm:$0xff]  }
 0x277   : > { %1922 = vmatprep.subr.bf16.mxu1 %v2939_v37  ;;  %1983 = vmatprep.subr.bf16.mxu0 %v2942_v38  ;;  %v3012_v37 = vld [vmem:[%s3476_s6 + $0x90] sm:$0xff]   ;;  %v3013_v38 = vld [vmem:[%s3476_s6 + $0xc8] sm:$0xff]  }
 0x27a   : > { %1923 = vmatpush1.bf16.msra.mxu1 %v2937_v20  ;;  %1984 = vmatpush2.bf16.msra.mxu0 %v2940_v39  ;;  %v3014_v20 = vld [vmem:[%s3476_s6 + $0x88] sm:$0xff]   ;;  %v3015_v39 = vld [vmem:[%s3476_s6 + $0xc0] sm:$0xff]  }
 0x27b   : > { %1924 = vmatprep.subr.bf16.mxu1 %v2945_v40  ;;  %1985 = vmatprep.subr.bf16.mxu0 %v2948_v41  ;;  %v3016_v40 = vld [vmem:[%s3476_s6 + $0x80] sm:$0xff]  }
 0x27e   : > { %1925 = vmatpush1.bf16.msra.mxu1 %v2943_v17  ;;  %1986 = vmatpush2.bf16.msra.mxu0 %v2946_v34 }
 0x27f   : > { %1926 = vmatprep.subr.bf16.mxu1 %v2951_v21  ;;  %1987 = vmatprep.subr.bf16.mxu0 %v2954_v42  ;;  %v1142_v21 = vld [vmem:[%s3475_s5] sm:$0xf] }
 0x280   : > { %v1151_v42 = vrot.slane %v1142_v21, %v960_v5 }
 0x282   : > { %1927 = vmatpush2.bf16.msra.mxu1 %v2949_v43  ;;  %1988 = vmatpush2.bf16.msra.mxu0 %v2952_v44  ;;  %v1147_v44 = vrot.slane %v1142_v21, %v956_v8 }
 0x283   : > { %1928 = vmatprep.subr.bf16.mxu1 %v2957_v45  ;;  %1989 = vmatprep.subr.bf16.mxu0 %v2960_v46 }
 0x286   : > { %1929 = vmatpush2.bf16.msra.mxu1 %v2955_v47  ;;  %1990 = vmatpush2.bf16.msra.mxu0 %v2958_v48 }
 0x287   : > { %1930 = vmatprep.subr.bf16.mxu1 %v2963_v49  ;;  %1991 = vmatprep.subr.bf16.mxu0 %v2966_v23 }
 0x28a   : > { %1931 = vmatpush2.bf16.msra.mxu1 %v2961_v50  ;;  %1992 = vmatpush2.bf16.msra.mxu0 %v2964_v51 }
 0x28b   : > { %1932 = vmatprep.subr.bf16.mxu1 %v2969_v52  ;;  %1993 = vmatprep.subr.bf16.mxu0 %v2972_v53 }
 0x28e   : > { %1933 = vmatpush2.bf16.msra.mxu1 %v2967_v54  ;;  %1994 = vmatpush2.bf16.msra.mxu0 %v2970_v56 }
 0x28f   : > { %1934 = vmatprep.subr.bf16.mxu1 %v2975_v57  ;;  %2739 = vmatprep.subr.bf16.mxu0 %v3001_v12 }
 0x291   : > { %1996 = vmatmul.mubr.bf16.vlgmr.msra.gmra.mxu0 %v3315_v63  ;;  %v2986_v63 = vld [vmem:[%s3476_s6 + $0x38] sm:$0xff]  }
 0x292   : > { %1935 = vmatpush2.bf16.msra.mxu1 %v2973_v58  ;;  %2005 = vmatprep.mubr.bf16.mxu0 %v3327_v36  ;;  %v2987_v36 = vld [vmem:[%s3476_s6 + $0x70] sm:$0xff]  }
 0x293   : > { %1936 = vmatprep.subr.bf16.mxu1 %v2978_v59  ;;  %2740 = vmatpush3.bf16.msra.mxu0 %v3002_v13 }
 0x294   : > { %2741 = vmatprep.subr.bf16.mxu0 %v3003_v14 }
 0x296   : > { %1937 = vmatpush2.bf16.msra.mxu1 %v2976_v60 }
 0x297   : > { %1938 = vmatprep.subr.bf16.mxu1 %v2981_v26  ;;  %2742 = vmatpush3.bf16.msra.mxu0 %v3004_v15 }
 0x298   : > { %2743 = vmatprep.subr.bf16.mxu0 %v3005_v16 }
 0x299   : > { %2006 = vmatmul.mubr.bf16.gmra.mxu0 %v3329_v18  ;;  %v2988_v18 = vld [vmem:[%s3476_s6 + $0x30] sm:$0xff]  }
 0x29a   : > { %1939 = vmatpush2.bf16.msra.mxu1 %v2979_v61 }
 0x29b   : > { %1940 = vmatprep.subr.bf16.mxu1 %v2984_v24  ;;  %2744 = vmatpush3.bf16.msra.mxu0 %v3006_v19  ;;  %v1159_v19 = vrot.slane %v1142_v21, %v968_v31 }
 0x29c   : > { %2745 = vmatprep.subr.bf16.mxu0 %v3007_v22 }
 0x29e   : > { %1941 = vmatpush2.bf16.msra.mxu1 %v2982_v27 }
 0x29f   : > { %2711 = vmatprep.subr.bf16.mxu1 %v2985_v62  ;;  %2746 = vmatpush3.bf16.msra.mxu0 %v3008_v25  ;;  %v1155_v25 = vrot.slane %v1142_v21, %v964_v33 }
 0x2a0   : > { %2747 = vmatprep.subr.bf16.mxu0 %v3009_v29 }
 0x2a1   : > { %1943 = vmatmul.mubr.bf16.vlgmr.msra.gmra.mxu1 %v3337_v55  ;;  %v2991_v55 = vld [vmem:[%s3476_s6 + $0x60] sm:$0xff]  }
 0x2a2   : > { %1952 = vmatprep.mubr.bf16.mxu1 %v3341_v30  ;;  %2712 = vmatpush3.bf16.msra.mxu1 %v2986_v63  ;;  %v2996_v30 = vld [vmem:[%s3476_s6 + $0x10] sm:$0xff]  }
 0x2a3   : > { %2713 = vmatprep.subr.bf16.mxu1 %v2987_v36  ;;  %2748 = vmatpush3.bf16.msra.mxu0 %v3010_v32 }
 0x2a4   : > { %2749 = vmatprep.subr.bf16.mxu0 %v3011_v35 }
 0x2a6   : > { %2714 = vmatpush3.bf16.msra.mxu1 %v2988_v18 }
 0x2a7   : > { %2715 = vmatprep.subr.bf16.mxu1 %v2989_v0  ;;  %2750 = vmatpush3.bf16.msra.mxu0 %v3012_v37 }
 0x2a8   : > { %2751 = vmatprep.subr.bf16.mxu0 %v3013_v38 }
 0x2a9   : > { %1953 = vmatmul.mubr.bf16.gmra.mxu1 %v3343_v10  ;;  %v2999_v10 = vld [vmem:[%s3476_s6 + $0x40] sm:$0xff]  }
 0x2aa   : > { %2716 = vmatpush3.bf16.msra.mxu1 %v2990_v1 }
 0x2ab   : > { %2717 = vmatprep.subr.bf16.mxu1 %v2991_v55  ;;  %2752 = vmatpush3.bf16.msra.mxu0 %v3014_v20 }
 0x2ac   : > { %2753 = vmatprep.subr.bf16.mxu0 %v3015_v39 }
 0x2ae   : > { %2718 = vmatpush3.bf16.msra.mxu1 %v2992_v2 }
 0x2af   : > { %2719 = vmatprep.subr.bf16.mxu1 %v2993_v3  ;;  %2754 = vmatpush3.bf16.msra.mxu0 %v3016_v40 }
 0x2b2   : > { %2720 = vmatpush3.bf16.msra.mxu1 %v2994_v4 }
 0x2b3   : > { %2721 = vmatprep.subr.bf16.mxu1 %v2995_v6 }
 0x2b6   : > { %2722 = vmatpush3.bf16.msra.mxu1 %v2996_v30 }
 0x2b7   : > { %2723 = vmatprep.subr.bf16.mxu1 %v2997_v7 }
 0x2ba   : > { %2724 = vmatpush3.bf16.msra.mxu1 %v2998_v9 }
 0x2bb   : > { %2725 = vmatprep.subr.bf16.mxu1 %v2999_v10 }
 0x2be   : > { %2726 = vmatpush3.bf16.msra.mxu1 %v3000_v11 }
 0x311   : > { %v1891_v41 = vpop.f32.mrf.mxu0 }
 0x313   : > { %v1893_v17 = vpop.f32.mrf.mxu0 }
 0x315   : > { %v1895_v34 = vpop.f32.mrf.mxu0 }
 0x317   : > { %v1897_v43 = vpop.f32.mrf.mxu0 }
 0x319   : > { %v1901_v48 = vpop.f32.mrf.mxu0 }
 0x31b   : > { %v1903_v56 = vpop.f32.mrf.mxu0 }
 0x31d   : > { %v1905_v24 = vpop.f32.mrf.mxu0 }
 0x31f   : > { %v1907_v4 = vpop.f32.mrf.mxu0 }
 0x321   : > { %v1838_v45 = vpop.f32.mrf.mxu1 }
 0x322   : > { %v1839_v49 = vadd.f32 %v1838_v45, %v1147_v44 }
 0x323   : > { %v1840_v46 = vpop.f32.mrf.mxu1 }
 0x324   : > { %v1841_v47 = vadd.f32 %v1840_v46, %v1151_v42  ;;  %v1892_v57 = vadd.f32 %v1891_v41, %v1839_v49 }
 0x325   : > { %v1842_v23 = vpop.f32.mrf.mxu1 }
 0x326   : > { %v1843_v50 = vadd.f32 %v1842_v23, %v1147_v44  ;;  %v1894_v52 = vadd.f32 %v1893_v17, %v1841_v47  ;;  %v2016_v27 = vmax.f32 %v1892_v57, 0.0 }
 0x327   : > { %v1844_v51 = vpop.f32.mrf.mxu1 }
 0x328   : > { %v1896_v53 = vadd.f32 %v1895_v34, %v1843_v50  ;;  %v1845_v54 = vadd.f32 %v1844_v51, %v1151_v42  ;;  %v2017_v26 = vmax.f32 %v1894_v52, 0.0 }
 0x329   : > { %v1848_v58 = vpop.f32.mrf.mxu1 }
 0x32a   : > { %v1898_v59 = vadd.f32 %v1897_v43, %v1845_v54  ;;  %v2020_v5 = vmax.f32 %v1896_v53, 0.0  ;;  %v1849_v62 = vadd.f32 %v1848_v58, %v1147_v44 }
 0x32b   : > { %v1850_v60 = vpop.f32.mrf.mxu1 }
 0x32c   : > { %v2021_v61 = vmax.f32 %v1898_v59, 0.0  ;;  %v1851_v8 = vadd.f32 %v1850_v60, %v1151_v42  ;;  %v2032_v0 = vpack.c.bf16 %v2020_v5, %v2016_v27  ;;  %v1902_v6 = vadd.f32 %v1901_v48, %v1849_v62 }
 0x32d   : > { %v1852_v63 = vpop.f32.mrf.mxu1 }
 0x32e   : > { %v1853_v36 = vadd.f32 %v1852_v63, %v1147_v44  ;;  %v2033_v18 = vpack.c.bf16 %v2021_v61, %v2017_v26  ;;  %v1904_v55 = vadd.f32 %v1903_v56, %v1851_v8  ;;  %v2024_v11 = vmax.f32 %v1902_v6, 0.0 }
 0x32f   : > { %v1854_v1 = vpop.f32.mrf.mxu1 }
 0x330   : > { %v1906_v2 = vadd.f32 %v1905_v24, %v1853_v36  ;;  %v1855_v3 = vadd.f32 %v1854_v1, %v1151_v42  ;;  %2335 = vmatprep.mubr.bf16.mxu1 %v2033_v18  ;;  %v2025_v9 = vmax.f32 %v1904_v55, 0.0  ;;  %v2674_v55 = vld [vmem:[%s3477_s7] ss:$0 sm:$0xff] }
 0x331   : > { %2336 = vmatmul.mubr.bf16.vlgmr.msra.gmra.mxu1 %v2032_v0 }
 0x332   : > { %v1908_v30 = vadd.f32 %v1907_v4, %v1855_v3  ;;  %v2028_v7 = vmax.f32 %v1906_v2, 0.0 }
 0x334   : > { %v2029_v10 = vmax.f32 %v1908_v30, 0.0  ;;  %v2036_v13 = vpack.c.bf16 %v2028_v7, %v2024_v11 }
 0x336   : > { %v2037_v12 = vpack.c.bf16 %v2029_v10, %v2025_v9 }
 0x338   : > { %2343 = vmatprep.mubr.bf16.mxu1 %v2037_v12 }
 0x339   : > { %2344 = vmatmul.mubr.bf16.gmra.mxu1 %v2036_v13 }
 0x351   : > { %v1997_v14 = vpop.f32.mrf.mxu0 }
 0x353   : > { %v1999_v15 = vpop.f32.mrf.mxu0 }
 0x355   : > { %v2001_v16 = vpop.f32.mrf.mxu0 }
 0x357   : > { %v2003_v22 = vpop.f32.mrf.mxu0 }
 0x359   : > { %v2007_v37 = vpop.f32.mrf.mxu0 }
 0x35b   : > { %v2009_v42 = vpop.f32.mrf.mxu0 }
 0x35d   : > { %v2011_v21 = vpop.f32.mrf.mxu0 }
 0x35f   : > { %v2013_v58 = vpop.f32.mrf.mxu0 }
 0x361   : > { %v1944_v29 = vpop.f32.mrf.mxu1 }
 0x362   : > { %v1945_v38 = vadd.f32 %v1944_v29, %v1155_v25 }
 0x363   : > { %v1946_v32 = vpop.f32.mrf.mxu1 }
 0x364   : > { %v1947_v35 = vadd.f32 %v1946_v32, %v1159_v19  ;;  %v1998_v43 = vadd.f32 %v1997_v14, %v1945_v38 }
 0x365   : > { %v1948_v20 = vpop.f32.mrf.mxu1 }
 0x366   : > { %v1949_v39 = vadd.f32 %v1948_v20, %v1155_v25  ;;  %v2000_v41 = vadd.f32 %v1999_v15, %v1947_v35  ;;  %v2018_v48 = vmax.f32 %v1998_v43, 0.0 }
 0x367   : > { %v1950_v40 = vpop.f32.mrf.mxu1 }
 0x368   : > { %v2002_v17 = vadd.f32 %v2001_v16, %v1949_v39  ;;  %v1951_v34 = vadd.f32 %v1950_v40, %v1159_v19  ;;  %v2019_v47 = vmax.f32 %v2000_v41, 0.0 }
 0x369   : > { %v1954_v44 = vpop.f32.mrf.mxu1 }
 0x36a   : > { %v2004_v45 = vadd.f32 %v2003_v22, %v1951_v34  ;;  %v2022_v31 = vmax.f32 %v2002_v17, 0.0  ;;  %v1955_v49 = vadd.f32 %v1954_v44, %v1155_v25 }
 0x36b   : > { %v1956_v46 = vpop.f32.mrf.mxu1 }
 0x36c   : > { %v2023_v28 = vmax.f32 %v2004_v45, 0.0  ;;  %v1957_v33 = vadd.f32 %v1956_v46, %v1159_v19  ;;  %v2034_v52 = vpack.c.bf16 %v2022_v31, %v2018_v48  ;;  %v2008_v59 = vadd.f32 %v2007_v37, %v1955_v49 }
 0x36d   : > { %v1958_v23 = vpop.f32.mrf.mxu1 }
 0x36e   : > { %v1959_v50 = vadd.f32 %v1958_v23, %v1155_v25  ;;  %v2035_v51 = vpack.c.bf16 %v2023_v28, %v2019_v47  ;;  %v2010_v54 = vadd.f32 %v2009_v42, %v1957_v33  ;;  %v2026_v8 = vmax.f32 %v2008_v59, 0.0 }
 0x36f   : > { %v1960_v53 = vpop.f32.mrf.mxu1 }
 0x370   : > { %v2012_v56 = vadd.f32 %v2011_v21, %v1959_v50  ;;  %v1961_v57 = vadd.f32 %v1960_v53, %v1159_v19  ;;  %2384 = vmatprep.mubr.bf16.mxu0 %v2035_v51  ;;  %v2027_v26 = vmax.f32 %v2010_v54, 0.0 }
 0x371   : > { %2385 = vmatmul.mubr.bf16.vlgmr.msra.gmra.mxu0 %v2034_v52 }
 0x372   : > { %v2014_v5 = vadd.f32 %v2013_v58, %v1961_v57  ;;  %v2030_v60 = vmax.f32 %v2012_v56, 0.0 }
 0x374   : > { %v2031_v61 = vmax.f32 %v2014_v5, 0.0  ;;  %v2038_v27 = vpack.c.bf16 %v2030_v60, %v2026_v8 }
 0x376   : > { %v2039_v24 = vpack.c.bf16 %v2031_v61, %v2027_v26 }
 0x378   : > { %2392 = vmatprep.mubr.bf16.mxu0 %v2039_v24 }
 0x379   : > { %2393 = vmatmul.mubr.bf16.gmra.mxu0 %v2038_v27 }
 0x3f1   : > { %v2727_v62 = vpop.f32.mrf.mxu1 }
 0x3f3   : > { %v2728_v63 = vpop.f32.mrf.mxu1 }
 0x3f4   : > { %v2729_v1 = vadd.f32 %v2728_v63, %v2727_v62 }
 0x3f5   : > { %v2730_v36 = vpop.f32.mrf.mxu1 }
 0x3f6   : > { %v2338_v6 = vadd.f32 %v2729_v1, %v2674_v55 }
 0x3f7   : > { %v2731_v18 = vpop.f32.mrf.mxu1 }
 0x3f8   : > { %v2732_v30 = vadd.f32 %v2731_v18, %v2730_v36 }
 0x3f9   : > { %v2733_v0 = vpop.f32.mrf.mxu1 }
 0x3fa   : > { %v2341_v13 = vadd.f32 %v2732_v30, %v2674_v55 }
 0x3fb   : > { %v2734_v2 = vpop.f32.mrf.mxu1 }
 0x3fc   : > { %v2735_v14 = vadd.f32 %v2734_v2, %v2733_v0 }
 0x3fd   : > { %v2736_v9 = vpop.f32.mrf.mxu1 }
 0x3fe   : > { %v2346_v29 = vadd.f32 %v2735_v14, %v2674_v55 }
 0x3ff   : > { %v2737_v16 = vpop.f32.mrf.mxu1 }
 0x400   : > { %v2738_v32 = vadd.f32 %v2737_v16, %v2736_v9 }
 0x402   : > { %v2349_v39 = vadd.f32 %v2738_v32, %v2674_v55 }
 0x431   : > { %v2755_v3 = vpop.f32.mrf.mxu0 }
 0x433   : > { %v2756_v4 = vpop.f32.mrf.mxu0 }
 0x434   : > { %v2757_v7 = vadd.f32 %v2756_v4, %v2755_v3 }
 0x435   : > { %v2758_v10 = vpop.f32.mrf.mxu0 }
 0x436   : > { %v2387_v11 = vadd.f32 %v2757_v7, %v2338_v6 }
 0x437   : > { %v2759_v12 = vpop.f32.mrf.mxu0 }
 0x438   : > { %2401 = vst [vmem:[%s340_s28] sm:$0xff] %v2387_v11  ;;  %v2760_v15 = vadd.f32 %v2759_v12, %v2758_v10 }
 0x439   : > { %v2761_v19 = vpop.f32.mrf.mxu0 }
 0x43a   : > { %v2390_v22 = vadd.f32 %v2760_v15, %v2341_v13 }
 0x43b   : > { %v2762_v25 = vpop.f32.mrf.mxu0 }
 0x43c   : > { %2402 = vst [vmem:[%s340_s28 + $0x8] sm:$0xff] %v2390_v22  ;;  %v2763_v35 = vadd.f32 %v2762_v25, %v2761_v19 }
 0x43d   : > { %v2764_v37 = vpop.f32.mrf.mxu0 }
 0x43e   : > { %v2395_v38 = vadd.f32 %v2763_v35, %v2346_v29 }
 0x43f   : > { %v2765_v20 = vpop.f32.mrf.mxu0 }
 0x440   : > { %2403 = vst [vmem:[%s340_s28 + $0x10] sm:$0xff] %v2395_v38  ;;  %v2766_v40 = vadd.f32 %v2765_v20, %v2764_v37 }
 0x442   : > { %v2398_v41 = vadd.f32 %v2766_v40, %v2349_v39 }
 0x444   : > { %2404 = vst [vmem:[%s340_s28 + $0x18] sm:$0xff] %v2398_v41 }
 0x445 PF: > { %s19_s27 = sadd.s32 1, %s3053_s27  }
 0x446   : > { %p16_p2 = scmp.ge.s32.totalorder %s19_s27, 4  }
 0x448   :  { %18 = sbr.rel (!%p16_p2) target bundleno = 1 (0x1), region = 90 }
 0x44d   :  { %2427 = vsyncpa [#allocation3], 1 }
 0x44e   :  { %2429 = vsyncpa [#allocation3 + $0x1], 1 }

</bundles_post_ra>
